<compile_context>
chip_gen: v7x
topology: tpu7x:2x2x1
jax: 0.10.0
libtpu: 0.0.40
codegen_flags: <defaults>
</compile_context>

<pallas_src>
import functools
import math

import jax
import jax.numpy as jnp
from jax.experimental import pallas as pl
from jax.experimental.pallas import tpu as pltpu

# --- module-level constants from the PyTorch source ---------------------------
D_CONST = 3
assert D_CONST != 2, "net_u constant 1/(d*(d-2)*V) is singular for d == 2"


def compute_nd_ball_volumn(d, R):
    return math.pi ** (d / 2) / math.gamma(d / 2 + 1) * R ** d


VOLUMN = compute_nd_ball_volumn(D_CONST, 1)


def _round_up(a, b):
    return ((a + b - 1) // b) * b


# --- Pallas kernel -------------------------------------------------------------
def resnet_tanh_kernel(xp_ref, w_ref, b_ref, wout_ref, o_ref, *,
                       boundary_control_type, compute_dtype):
    # xp_ref  : [p, tn]   transposed input, zero-padded from dim -> p (=8) rows, f32
    # w_ref   : [6, m, m] stacked weights (w1 zero-padded in trailing cols), f32/bf16
    # b_ref   : [6, m, 1] stacked biases (column vectors, broadcast over lanes), f32
    # wout_ref: [1, m]    output projection (no bias), f32/bf16
    # o_ref   : [1, tn]   lane-dense output row, f32
    p, tn = xp_ref.shape
    m = w_ref.shape[1]

    xp = xp_ref[...]                                        # [p, tn] f32

    # Zero-extend the p feature rows to m once (replaces x @ Ix); rows p..m-1 = 0.
    if m > p:
        s0 = jnp.concatenate(
            [xp, jnp.zeros((m - p, tn), jnp.float32)], axis=0)   # [m, tn]
    else:
        s0 = xp

    y = s0.astype(compute_dtype)        # fc1 input (w1 is zero-padded to match)
    s = y                               # residual skip == zero-padded x
    for k in range(6):                  # fc1..fc6, tanh after each
        acc = jnp.dot(w_ref[k], y, preferred_element_type=jnp.float32) + b_ref[k]
        y = jnp.tanh(acc.astype(compute_dtype))
        if k % 2 == 1:                  # residual add after fc2, fc4, fc6
            y = y + s
            s = y

    # output projection -> [1, tn]
    out = jnp.dot(wout_ref[...], y, preferred_element_type=jnp.float32)

    if boundary_control_type in ("net_u", "net_v"):
        # only the p (=8) padded feature rows carry data; rows dim..p-1 are zero
        r = jnp.sum(xp * xp, axis=0, keepdims=True)         # [1, tn]
        g = jnp.cos(jnp.pi * 0.5 * r) * out
        if boundary_control_type == "net_u":
            g = g + 1.0 / (D_CONST * (D_CONST - 2) * VOLUMN)
        o_ref[...] = g
    else:
        # 'none' returns the raw projection.
        # TODO(synk): PyTorch default 'cube' falls through every branch and returns
        # None; there is no tensor semantics to reproduce, so the kernel returns the
        # raw projection in that case.
        o_ref[...] = out


# --- wrapper -------------------------------------------------------------------
def _pack_params(params, dim, m, compute_dtype):
    """Stack torch-layout weights into [6, m, m] / [6, m, 1] and return wout."""
    W = jnp.zeros((6, m, m), jnp.float32)
    W = W.at[0, :, :dim].set(jnp.asarray(params["w1"], jnp.float32))  # fc1: [m, dim]
    for i in range(2, 7):
        W = W.at[i - 1].set(jnp.asarray(params[f"w{i}"], jnp.float32))
    B = jnp.stack([jnp.asarray(params[f"b{i}"], jnp.float32)
                   for i in range(1, 7)], axis=0)[:, :, None]          # [6, m, 1]
    wout = jnp.asarray(params["wout"], jnp.float32)                    # [1, m]
    return W.astype(compute_dtype), B, wout.astype(compute_dtype)


def resnet_tanh_forward(x, params, boundary_control_type="net_u",
                        tn=1024, use_bf16=False):
    """x: [N, dim] f32 -> [N] f32. tn: batch tile (multiple of 128)."""
    N, dim = x.shape
    m = params["w1"].shape[0]
    p = _round_up(max(dim, 1), 8)           # pad features to one sublane tile only
    assert p <= m, "hidden width m must be >= padded input dim"

    compute_dtype = jnp.bfloat16 if use_bf16 else jnp.float32

    # Effective batch tile: multiple of 128, shrunk for small N; pad N up to it.
    tn = _round_up(tn, 128)
    tn_eff = min(tn, _round_up(N, 128))
    n_pad = _round_up(N, tn_eff)

    W, B, wout = _pack_params(params, dim, m, compute_dtype)

    # Transpose + zero-pad features to p rows and batch to n_pad lanes (f32 so the
    # r = sum(x**2) epilogue keeps full precision).
    x_pad = jnp.zeros((p, n_pad), jnp.float32)
    x_pad = x_pad.at[:dim, :N].set(x.T.astype(jnp.float32))

    kernel = functools.partial(
        resnet_tanh_kernel,
        boundary_control_type=boundary_control_type,
        compute_dtype=compute_dtype,
    )

    cost = pl.CostEstimate(
        flops=int(n_pad * (6 * 2 * m * m + 2 * m)),
        transcendentals=int(n_pad * (6 * m + 1)),
        bytes_accessed=int(4 * (p * n_pad + n_pad)
                           + W.size * W.dtype.itemsize
                           + B.size * 4
                           + wout.size * wout.dtype.itemsize),
    )

    out = pl.pallas_call(
        kernel,
        out_shape=jax.ShapeDtypeStruct((1, n_pad), jnp.float32),
        grid=(n_pad // tn_eff,),
        in_specs=[
            pl.BlockSpec((p, tn_eff), lambda i: (0, i)),     # x tile (batch on lanes)
            pl.BlockSpec((6, m, m), lambda i: (0, 0, 0)),    # stacked weights (resident)
            pl.BlockSpec((6, m, 1), lambda i: (0, 0, 0)),    # stacked biases   (resident)
            pl.BlockSpec((1, m), lambda i: (0, 0)),          # output projection
        ],
        out_specs=pl.BlockSpec((1, tn_eff), lambda i: (0, i)),  # lane-dense output row
        compiler_params=pltpu.CompilerParams(
            dimension_semantics=("parallel",)                 # shards across v7x TCs
        ),
        cost_estimate=cost,
    )(x_pad, W, B, wout)

    # matches y.squeeze(1) in the PyTorch forward; drop batch padding
    return out[0, :N]


# --- deterministic parameter init (PyTorch nn.Linear-style uniform) ------------
def init_params(key, dim, m):
    def linear(k, fan_in, fan_out):
        kw, kb = jax.random.split(k)
        bound = 1.0 / math.sqrt(fan_in)
        w = jax.random.uniform(kw, (fan_out, fan_in), jnp.float32, -bound, bound)
        b = jax.random.uniform(kb, (fan_out,), jnp.float32, -bound, bound)
        return w, b

    keys = jax.random.split(key, 7)
    params = {}
    params["w1"], params["b1"] = linear(keys[0], dim, m)
    for i in range(2, 7):
        params[f"w{i}"], params[f"b{i}"] = linear(keys[i - 1], m, m)
    bound = 1.0 / math.sqrt(m)
    params["wout"] = jax.random.uniform(keys[6], (1, m), jnp.float32, -bound, bound)
    return params


# --- pure-JAX reference for validation ------------------------------------------
def reference_forward(x, p, boundary_control_type):
    dim = x.shape[1]
    m = p["w1"].shape[0]
    Ix = jnp.zeros((dim, m), jnp.float32).at[jnp.arange(dim), jnp.arange(dim)].set(1.0)
    s = x @ Ix
    y = jnp.tanh(x @ p["w1"].T + p["b1"])
    y = jnp.tanh(y @ p["w2"].T + p["b2"]) + s
    s = y
    y = jnp.tanh(y @ p["w3"].T + p["b3"])
    y = jnp.tanh(y @ p["w4"].T + p["b4"]) + s
    s = y
    y = jnp.tanh(y @ p["w5"].T + p["b5"])
    y = jnp.tanh(y @ p["w6"].T + p["b6"]) + s
    y = y @ p["wout"].T                   # [N, 1]
    if boundary_control_type == "none":
        return y[:, 0]
    r = jnp.sum(x ** 2, axis=1)
    if boundary_control_type == "net_u":
        return jnp.cos(jnp.pi / 2 * r) * y[:, 0] + 1.0 / (D_CONST * (D_CONST - 2) * VOLUMN)
    return jnp.cos(jnp.pi / 2 * r) * y[:, 0]


if __name__ == "__main__":
    N, dim, m = 2048, 2, 32        # N gives 2 "parallel" grid steps at tn=1024

    key = jax.random.PRNGKey(0)
    kx, kp = jax.random.split(key)

    x = jax.random.uniform(kx, (N, dim), jnp.float32, -1.0, 1.0)
    params = init_params(kp, dim, m)

    ok = True

    # f32 path, all boundary-control branches
    for btype in ("none", "net_u", "net_v"):
        out = jax.block_until_ready(
            resnet_tanh_forward(x, params, boundary_control_type=btype))
        ref = reference_forward(x, params, btype)
        ok = ok and bool(jnp.allclose(out, ref, atol=1e-5, rtol=1e-5))

    # batch size not a multiple of the tile (exercises padding path)
    xr = x[:1000]
    out_r = jax.block_until_ready(
        resnet_tanh_forward(xr, params, boundary_control_type="net_u", tn=512))
    ref_r = reference_forward(xr, params, "net_u")
    ok = ok and bool(jnp.allclose(out_r, ref_r, atol=1e-5, rtol=1e-5))

    # optional bf16 compute path (v6e/v7x EUP lever); loose accuracy gate
    out_b = jax.block_until_ready(
        resnet_tanh_forward(x, params, boundary_control_type="net_u", use_bf16=True))
    ref_b = reference_forward(x, params, "net_u")
    ok = ok and bool(jnp.max(jnp.abs(out_b - ref_b)) < 1e-1)

    print("KERNEL_OK" if ok else "MISMATCH")
</pallas_src>

<mosaic_0001>
module attributes {stable_mosaic.version = 11 : i64} {
  func.func @resnet_tanh_kernel(%arg0: i32, %arg1: memref<8x1024xf32, #tpu.memory_space<vmem>>, %arg2: memref<6x32x32xf32, #tpu.memory_space<vmem>>, %arg3: memref<6x32x1xf32, #tpu.memory_space<vmem>>, %arg4: memref<1x32xf32, #tpu.memory_space<vmem>>, %arg5: memref<1x1024xf32, #tpu.memory_space<vmem>>) attributes {dimension_semantics = [#tpu.dimension_semantics<parallel>], iteration_bounds = array<i64: 2>, scalar_prefetch = 0 : i64, scratch_operands = 0 : i64, tpu.core_type = #tpu.core_type<tc>, window_params = [{transform_indices = @transform_0, window_bounds = array<i64: 8, 1024>}, {pipeline_mode = #tpu.pipeline_mode<synchronous>, transform_indices = @transform_1, window_bounds = array<i64: 6, 32, 32>}, {pipeline_mode = #tpu.pipeline_mode<synchronous>, transform_indices = @transform_2, window_bounds = array<i64: 6, 32, 1>}, {pipeline_mode = #tpu.pipeline_mode<synchronous>, transform_indices = @transform_3, window_bounds = array<i64: 1, 32>}, {transform_indices = @transform_4, window_bounds = array<i64: 1, 1024>}]} {
    %c0 = arith.constant 0 : index
    %c0_0 = arith.constant 0 : index
    %0 = vector.load %arg1[%c0, %c0_0] : memref<8x1024xf32, #tpu.memory_space<vmem>>, vector<8x1024xf32>
    %cst = arith.constant 0.000000e+00 : f32
    %1 = vector.broadcast %cst : f32 to vector<24x1024xf32>
    %2 = tpu.concatenate %0, %1 in 0 : vector<8x1024xf32>, vector<24x1024xf32> -> vector<32x1024xf32>
    %c0_1 = arith.constant 0 : index
    %c0_2 = arith.constant 0 : index
    %c0_3 = arith.constant 0 : index
    %3 = vector.load %arg2[%c0_1, %c0_2, %c0_3] : memref<6x32x32xf32, #tpu.memory_space<vmem>>, vector<1x32x32xf32>
    %4 = vector.shape_cast %3 : vector<1x32x32xf32> to vector<32x32xf32>
    %cst_4 = arith.constant dense<0.000000e+00> : vector<32x1024xf32>
    %5 = tpu.matmul %4, %2, %cst_4 {dimension_numbers = #tpu.dot_dimension_numbers<[1], [0], [0], [1], [0, 0, 1, 1], [], []>} : vector<32x32xf32>, vector<32x1024xf32>, vector<32x1024xf32> -> vector<32x1024xf32>
    %c0_5 = arith.constant 0 : index
    %c0_6 = arith.constant 0 : index
    %c0_7 = arith.constant 0 : index
    %6 = vector.load %arg3[%c0_5, %c0_6, %c0_7] : memref<6x32x1xf32, #tpu.memory_space<vmem>>, vector<1x32x1xf32>
    %7 = vector.shape_cast %6 : vector<1x32x1xf32> to vector<32x1xf32>
    %8 = vector.broadcast %7 : vector<32x1xf32> to vector<32x1024xf32>
    %9 = arith.addf %5, %8 : vector<32x1024xf32>
    %10 = math.tanh %9 : vector<32x1024xf32>
    %c1 = arith.constant 1 : index
    %c0_8 = arith.constant 0 : index
    %c0_9 = arith.constant 0 : index
    %11 = vector.load %arg2[%c1, %c0_8, %c0_9] : memref<6x32x32xf32, #tpu.memory_space<vmem>>, vector<1x32x32xf32>
    %12 = vector.shape_cast %11 : vector<1x32x32xf32> to vector<32x32xf32>
    %cst_10 = arith.constant dense<0.000000e+00> : vector<32x1024xf32>
    %13 = tpu.matmul %12, %10, %cst_10 {dimension_numbers = #tpu.dot_dimension_numbers<[1], [0], [0], [1], [0, 0, 1, 1], [], []>} : vector<32x32xf32>, vector<32x1024xf32>, vector<32x1024xf32> -> vector<32x1024xf32>
    %c1_11 = arith.constant 1 : index
    %c0_12 = arith.constant 0 : index
    %c0_13 = arith.constant 0 : index
    %14 = vector.load %arg3[%c1_11, %c0_12, %c0_13] : memref<6x32x1xf32, #tpu.memory_space<vmem>>, vector<1x32x1xf32>
    %15 = vector.shape_cast %14 : vector<1x32x1xf32> to vector<32x1xf32>
    %16 = vector.broadcast %15 : vector<32x1xf32> to vector<32x1024xf32>
    %17 = arith.addf %13, %16 : vector<32x1024xf32>
    %18 = math.tanh %17 : vector<32x1024xf32>
    %19 = arith.addf %18, %2 : vector<32x1024xf32>
    %c2 = arith.constant 2 : index
    %c0_14 = arith.constant 0 : index
    %c0_15 = arith.constant 0 : index
    %20 = vector.load %arg2[%c2, %c0_14, %c0_15] : memref<6x32x32xf32, #tpu.memory_space<vmem>>, vector<1x32x32xf32>
    %21 = vector.shape_cast %20 : vector<1x32x32xf32> to vector<32x32xf32>
    %cst_16 = arith.constant dense<0.000000e+00> : vector<32x1024xf32>
    %22 = tpu.matmul %21, %19, %cst_16 {dimension_numbers = #tpu.dot_dimension_numbers<[1], [0], [0], [1], [0, 0, 1, 1], [], []>} : vector<32x32xf32>, vector<32x1024xf32>, vector<32x1024xf32> -> vector<32x1024xf32>
    %c2_17 = arith.constant 2 : index
    %c0_18 = arith.constant 0 : index
    %c0_19 = arith.constant 0 : index
    %23 = vector.load %arg3[%c2_17, %c0_18, %c0_19] : memref<6x32x1xf32, #tpu.memory_space<vmem>>, vector<1x32x1xf32>
    %24 = vector.shape_cast %23 : vector<1x32x1xf32> to vector<32x1xf32>
    %25 = vector.broadcast %24 : vector<32x1xf32> to vector<32x1024xf32>
    %26 = arith.addf %22, %25 : vector<32x1024xf32>
    %27 = math.tanh %26 : vector<32x1024xf32>
    %c3 = arith.constant 3 : index
    %c0_20 = arith.constant 0 : index
    %c0_21 = arith.constant 0 : index
    %28 = vector.load %arg2[%c3, %c0_20, %c0_21] : memref<6x32x32xf32, #tpu.memory_space<vmem>>, vector<1x32x32xf32>
    %29 = vector.shape_cast %28 : vector<1x32x32xf32> to vector<32x32xf32>
    %cst_22 = arith.constant dense<0.000000e+00> : vector<32x1024xf32>
    %30 = tpu.matmul %29, %27, %cst_22 {dimension_numbers = #tpu.dot_dimension_numbers<[1], [0], [0], [1], [0, 0, 1, 1], [], []>} : vector<32x32xf32>, vector<32x1024xf32>, vector<32x1024xf32> -> vector<32x1024xf32>
    %c3_23 = arith.constant 3 : index
    %c0_24 = arith.constant 0 : index
    %c0_25 = arith.constant 0 : index
    %31 = vector.load %arg3[%c3_23, %c0_24, %c0_25] : memref<6x32x1xf32, #tpu.memory_space<vmem>>, vector<1x32x1xf32>
    %32 = vector.shape_cast %31 : vector<1x32x1xf32> to vector<32x1xf32>
    %33 = vector.broadcast %32 : vector<32x1xf32> to vector<32x1024xf32>
    %34 = arith.addf %30, %33 : vector<32x1024xf32>
    %35 = math.tanh %34 : vector<32x1024xf32>
    %36 = arith.addf %35, %19 : vector<32x1024xf32>
    %c4 = arith.constant 4 : index
    %c0_26 = arith.constant 0 : index
    %c0_27 = arith.constant 0 : index
    %37 = vector.load %arg2[%c4, %c0_26, %c0_27] : memref<6x32x32xf32, #tpu.memory_space<vmem>>, vector<1x32x32xf32>
    %38 = vector.shape_cast %37 : vector<1x32x32xf32> to vector<32x32xf32>
    %cst_28 = arith.constant dense<0.000000e+00> : vector<32x1024xf32>
    %39 = tpu.matmul %38, %36, %cst_28 {dimension_numbers = #tpu.dot_dimension_numbers<[1], [0], [0], [1], [0, 0, 1, 1], [], []>} : vector<32x32xf32>, vector<32x1024xf32>, vector<32x1024xf32> -> vector<32x1024xf32>
    %c4_29 = arith.constant 4 : index
    %c0_30 = arith.constant 0 : index
    %c0_31 = arith.constant 0 : index
    %40 = vector.load %arg3[%c4_29, %c0_30, %c0_31] : memref<6x32x1xf32, #tpu.memory_space<vmem>>, vector<1x32x1xf32>
    %41 = vector.shape_cast %40 : vector<1x32x1xf32> to vector<32x1xf32>
    %42 = vector.broadcast %41 : vector<32x1xf32> to vector<32x1024xf32>
    %43 = arith.addf %39, %42 : vector<32x1024xf32>
    %44 = math.tanh %43 : vector<32x1024xf32>
    %c5 = arith.constant 5 : index
    %c0_32 = arith.constant 0 : index
    %c0_33 = arith.constant 0 : index
    %45 = vector.load %arg2[%c5, %c0_32, %c0_33] : memref<6x32x32xf32, #tpu.memory_space<vmem>>, vector<1x32x32xf32>
    %46 = vector.shape_cast %45 : vector<1x32x32xf32> to vector<32x32xf32>
    %cst_34 = arith.constant dense<0.000000e+00> : vector<32x1024xf32>
    %47 = tpu.matmul %46, %44, %cst_34 {dimension_numbers = #tpu.dot_dimension_numbers<[1], [0], [0], [1], [0, 0, 1, 1], [], []>} : vector<32x32xf32>, vector<32x1024xf32>, vector<32x1024xf32> -> vector<32x1024xf32>
    %c5_35 = arith.constant 5 : index
    %c0_36 = arith.constant 0 : index
    %c0_37 = arith.constant 0 : index
    %48 = vector.load %arg3[%c5_35, %c0_36, %c0_37] : memref<6x32x1xf32, #tpu.memory_space<vmem>>, vector<1x32x1xf32>
    %49 = vector.shape_cast %48 : vector<1x32x1xf32> to vector<32x1xf32>
    %50 = vector.broadcast %49 : vector<32x1xf32> to vector<32x1024xf32>
    %51 = arith.addf %47, %50 : vector<32x1024xf32>
    %52 = math.tanh %51 : vector<32x1024xf32>
    %53 = arith.addf %52, %36 : vector<32x1024xf32>
    %c0_38 = arith.constant 0 : index
    %c0_39 = arith.constant 0 : index
    %54 = vector.load %arg4[%c0_38, %c0_39] : memref<1x32xf32, #tpu.memory_space<vmem>>, vector<1x32xf32>
    %cst_40 = arith.constant dense<0.000000e+00> : vector<1x1024xf32>
    %55 = tpu.matmul %54, %53, %cst_40 {dimension_numbers = #tpu.dot_dimension_numbers<[1], [0], [0], [1], [0, 0, 1, 1], [], []>} : vector<1x32xf32>, vector<32x1024xf32>, vector<1x1024xf32> -> vector<1x1024xf32>
    %c0_41 = arith.constant 0 : index
    %c0_42 = arith.constant 0 : index
    %56 = vector.load %arg5[%c0_41, %c0_42] : memref<1x1024xf32, #tpu.memory_space<vmem>>, vector<1x1024xf32>
    tpu.vector_store %arg5[%c0_41, %c0_42], %55 {strides = array<i32>} : memref<1x1024xf32, #tpu.memory_space<vmem>>, vector<1x1024xf32>,
    return
  }
  func.func @transform_0(%arg0: i32) -> (i32, i32) {
    %c0_i32 = arith.constant 0 : i32
    %c0_i32_0 = arith.constant 0 : i32
    return %c0_i32, %arg0 : i32, i32
  }
  func.func @transform_1(%arg0: i32) -> (i32, i32, i32) {
    %c0_i32 = arith.constant 0 : i32
    %c0_i32_0 = arith.constant 0 : i32
    %c0_i32_1 = arith.constant 0 : i32
    %c0_i32_2 = arith.constant 0 : i32
    return %c0_i32, %c0_i32_0, %c0_i32_1 : i32, i32, i32
  }
  func.func @transform_2(%arg0: i32) -> (i32, i32, i32) {
    %c0_i32 = arith.constant 0 : i32
    %c0_i32_0 = arith.constant 0 : i32
    %c0_i32_1 = arith.constant 0 : i32
    %c0_i32_2 = arith.constant 0 : i32
    return %c0_i32, %c0_i32_0, %c0_i32_1 : i32, i32, i32
  }
  func.func @transform_3(%arg0: i32) -> (i32, i32) {
    %c0_i32 = arith.constant 0 : i32
    %c0_i32_0 = arith.constant 0 : i32
    %c0_i32_1 = arith.constant 0 : i32
    return %c0_i32, %c0_i32_0 : i32, i32
  }
  func.func @transform_4(%arg0: i32) -> (i32, i32) {
    %c0_i32 = arith.constant 0 : i32
    %c0_i32_0 = arith.constant 0 : i32
    return %c0_i32, %arg0 : i32, i32
  }
}

</mosaic_0001>

<bundles_post_ra>
// kernel: tpu_custom_call.1
= control target key start
LH: loop header
LB: loop body
LE: loop exit
PB: predicated region body
PF: predicated region fallthrough
CT: control target
= control target key end

     0   :  { %9 = vsyncpa [#allocation3], 0  ;;  %s5285_s0 = inlined_call_operand.hbm [shape: f32[8,2048], index: 0, kind: input, shape index: {}]   ;;  %s5286_s1 = inlined_call_operand.vmem [shape: f32[6,32,32], index: 1, kind: input, shape index: {}]   ;;  %s5287_s2 = inlined_call_operand.vmem [shape: f32[6,32,1], index: 2, kind: input, shape index: {}]   ;;  %s5288_s3 = inlined_call_operand.vmem [shape: f32[1,32], index: 3, kind: input, shape index: {}]   ;;  %s5289_s4 = inlined_call_operand.hbm [shape: f32[1,2048], index: 4, kind: output, shape index: {}]  }
   0x1   :  { %11 = vsyncpa [#allocation3 + $0x1], 0 }
   0x2   :  { %12 = vsyncpa [#allocation4], 0 }
   0x3   :  { %14 = vsyncpa [#allocation4 + $0x1], 0  ;;  %s4242_s15 = smov 0   ;;  %s4244_s16 = smov 0  }
   0x4   :  { %s4246_s17 = smov 0   ;;  %s4248_s18 = smov 0  }
   0x5 LB: > { %s4263_s19 = sadd.s32 4294967295, %s4210_s18   ;;  %s3331_s20 = sadd.s32 4294967294, %s4210_s18   ;;  %s4210_s18 = sphi %s4248_s18, %s5304_s18   ;;  %s4206_s17 = sphi %s4246_s17, %s5303_s17   ;;  %s4202_s16 = sphi %s4244_s16, %s5302_s16   ;;  %s4198_s15 = sphi %s4242_s15, %s5301_s15  }
   0x6   : > { %s4267_s21 = sadd.s32 1, %s4210_s18   ;;  %s27_s22 = sadd.s32 1, %s4206_s17 }
   0x7   : > { %s24_s23 = ssub.s32 %s4210_s18, %s4267_s21  ;;  %p34_p0 = scmp.ne.s32.totalorder %s4206_s17, %s4202_s16 }
   0x8   : > { %p25_p1 = scmp.eq.s32.totalorder %s24_s23, 0  ;;  %p35_p2 = scmp.eq.s32.totalorder %s4210_s18, 0 }
   0x9   : > { %p40_p3 = scmp.ne.s32.totalorder %s4202_s16, %s4198_s15  ;;  %p41_p4 = scmp.eq.s32.totalorder %s4263_s19, 0 }
   0xa   : > { %s4279_s24 = scalar_select %p25_p1, %s4206_s17, %s27_s22  }
   0xb   : > { %p4281_p5 = por %p35_p2, %p34_p0  ;;  %p4285_p6 = por %p41_p4, %p40_p3 }
   0xc   : > { %p127_p7 = scmp.eq.s32.totalorder %s4263_s19, 1  ;;  %p133_p8 = scmp.eq.s32.totalorder %s3331_s20, 1 }
   0xd   : > { %p3691_p10 = scmp.lt.s32.totalorder %s4210_s18, 2  ;;  %s162_s29 = sand.u32 1, %s4206_s17  }
   0xe   : > { %p4292_p11 = por %p127_p7, %p34_p0  ;;  %p4296_p12 = por %p133_p8, %p40_p3 }
   0xf   : > { %s3485_s30 = sshll.u32 %s4210_s18, 10  ;;  %s3334_s5 = sshll.u32 %s162_s29, 6 }
  0x10   : > { %s5293_s27 = scalar_select %p4292_p11, 1, 0 }
  0x11   : > { %s5294_s28 = scalar_select %p4296_p12, 1, 0 }
  0x12   : > { %s4305_s8 = scalar_lea.hbm %s5285_s0, %s3485_s30  ;;  %s166_s9 = scalar_lea.vmem [#allocation2], %s3334_s5 }
  0x13   : > { %s174_s10 = sshll.u32 %s166_s9, 4  ;;  %p4309_p13 = pnand %p3691_p10, %p4281_p5  ;;  %s4313_s10 = int_to_ptr.vmem [resolvable:$true] %s174_s10 }
  0x14   : > { %s163_s12 = scalar_lea.sflag [#allocation3], %s162_s29  ;;  %s4114_s13 = scalar_lea.hbm %s4305_s8, 1024 }
  0x15   : > { %p4115_p2 = scmp.ne.s32.totalorder %s4305_s8, %s4114_s13  ;;  %p4116_p3 = pneg %p4309_p13 }
  0x16   : > { %s4119_s22 = scalar_lea.hbm %s5285_s0, 2048  ;;  %p4120_p5 = scmp.lt.u32.totalorder %s4305_s8, %s5285_s0 }
  0x17   : > { %p4117_p4 = pnand %p4116_p3, %p4115_p2  ;;  %p4121_p8 = scmp.lt.u32.totalorder %s4119_s22, %s4114_s13 }
  0x18   : > { %p4123_p9 = scmp.lt.u32.totalorder %s4114_s13, %s4305_s8 }
  0x19   : > { %p4118_p7 = pneg %p4117_p4  ;;  %p4122_p10 = por %p4121_p8, %p4120_p5 }
  0x1b   : > { %p4124_p0 = por %p4123_p9, %p4122_p10 }
  0x1d   : > { %p4125_p1 = pnand %p4124_p0, %p4118_p7 }
  0x1f   : > { %4128 = shalt.err (!%p4125_p1)
}
  0x20   : > { %s4129_s29 = scalar_lea.vmem %s4313_s10, 1024  ;;  %s4212_s30 = smov [#allocation2]  }
  0x21   : > { %p4130_p2 = scmp.ne.s32.totalorder %s4313_s10, %s4129_s29  ;;  %s4134_s5 = sshll.u32 %s4212_s30, 4  ;;  %s4135_s5 = int_to_ptr.vmem [resolvable:$false] %s4134_s5 }
  0x22   : > { %s4136_s6 = scalar_lea.vmem %s4135_s5, 2048  ;;  %p4137_p11 = scmp.lt.s32.totalorder %s4313_s10, %s4135_s5 }
  0x23   : > { %p4132_p4 = pnand %p4130_p2, %p4116_p3  ;;  %p4138_p5 = scmp.lt.s32.totalorder %s4136_s6, %s4129_s29 }
  0x25   : > { %p4133_p12 = pneg %p4132_p4  ;;  %p4139_p8 = por %p4138_p5, %p4137_p11 }
  0x27   : > { %p4140_p9 = pnand %p4139_p8, %p4133_p12 }
  0x29   : > { %4143 = shalt.err (!%p4140_p9)
}
  0x2a   : > { %3686 = dma.hbm_to_vmem [thread:$0]  (!%p4309_p13), %s4305_s8, 1024, %s4313_s10, %s163_s12  }
  0x2b   : > { %p5296_p0 = scmp.lt.s32.totalorder %s4210_s18, 3  ;;  %p5297_p1 = scmp.ge.s32.totalorder %s4210_s18, 1 }
  0x2d   : > { %p180_p3 = pnand %p5297_p1, %p5296_p0 }
  0x2e   : > { %s4347_s7 = sand.u32 (!%p180_p3), 1, %s4202_s16  }
  0x2f   : > { %183 = sbr.rel (%p180_p3) target bundleno = 1791 (0x6ff), region = 36  ;;  %s3338_s9 = sshll.u32 (!%p180_p3), %s4347_s7, 6 }
  0x30   : > { %s186_s13 = scalar_lea.sflag (!%p180_p3), [#allocation3], %s4347_s7  ;;  %s189_s14 = scalar_lea.vmem (!%p180_p3), [#allocation2], %s3338_s9 }
  0x36   : > { %4189 = dma.done.wait (%p4285_p6), %s186_s13, 1024  }
  0x37   : > { %4191 = vsyncadd (%p4285_p6), %s186_s13, 4294966272  ;;  %v4213_v0 = vmov 0.0   ;;  %v4214_v1 = vmov 0   ;;  %v4357_v2 = vld [vmem:[%s189_s14 + $0x8] sm:$0xff]  ;;  %v4359_v3 = vld [vmem:[%s189_s14 + $0x18] sm:$0xff]  ;;  %vm252_vm0 = vcmask 261120  }
  0x38   : > { %329 = vmatprep.mubr.f32.mxu0 %v4213_v0  ;;  %418 = vmatprep.mubr.f32.mxu1 %v4213_v0  ;;  %v4361_v4 = vld [vmem:[%s189_s14] sm:$0xff]  ;;  %v4365_v5 = vld [vmem:[%s189_s14 + $0x10] sm:$0xff]  ;;  %v4372_v7 = vld [vmem:[%s189_s14 + $0x28] sm:$0xff]  ;;  %s3339_s10 = sshll.u32 %s4347_s7, 3  ;;  %s3486_s11 = sshll.u32 %s4263_s19, 7 }
  0x39   : > { %3728 = vset.pattern.permute.xlu0 %v4214_v1  ;;  %3729 = vset.pattern.permute.xlu1 %v4214_v1  ;;  %v224_v6 = vld [vmem:[%s5286_s1] sm:$0xff]  ;;  %v4374_v8 = vld [vmem:[%s189_s14 + $0x38] sm:$0xff]  ;;  %v4380_v10 = vld [vmem:[%s189_s14 + $0x30] sm:$0xff]  ;;  %s213_s12 = scalar_lea.vmem [#allocation5], %s3339_s10  ;;  %s5241_s25 = scalar_lea.hbm %s5289_s4, %s3486_s11 }
  0x3a   : > { %265 = vmatprep.subr.mxu0 %v4357_v2  ;;  %354 = vmatprep.subr.mxu1 %v4359_v3  ;;  %v4378_v9 = vld [vmem:[%s189_s14 + $0x20] sm:$0xff]  ;;  %v225_v11 = vld [vmem:[%s5286_s1 + $0x8] sm:$0xff]  ;;  %v230_v13 = vld [vmem:[%s5287_s2 + $0x10] sm:$0xff]  ;;  %s3261_s20 = sshll.u32 %s213_s12, 4  ;;  %s3247_s29 = scalar_lea.sflag [#allocation4], %s4347_s7  ;;  %s5243_s20 = int_to_ptr.vmem [resolvable:$true] %s3261_s20 }
  0x3b   : > { %266 = vmatpush1.msra.mxu0 %v4361_v4  ;;  %355 = vmatpush1.msra.mxu1 %v4365_v5  ;;  %v228_v12 = vld [vmem:[%s5287_s2] sm:$0xff]  ;;  %v226_v14 = vld [vmem:[%s5286_s1 + $0x10] sm:$0xff]  ;;  %v229_v15 = vld [vmem:[%s5287_s2 + $0x8] sm:$0xff]  ;;  %s4144_s30 = scalar_lea.vmem %s5243_s20, 128  ;;  %p5298_p11 = scmp.ne.s32.totalorder %s5293_s27, 0 }
  0x3c   : > { %3340 = vmatmul.mubr.msk.f32.vlgmr.msra.gmra.mrb[0].mxu0 %vm252_vm0, %v224_v6  ;;  %3344 = vmatmul.mubr.msk.f32.vlgmr.msra.gmra.mrb[0].mxu1 %vm252_vm0, %v224_v6  ;;  %v231_v16 = vld [vmem:[%s5287_s2 + $0x18] sm:$0xff]  ;;  %v3360_v18 = vld [vmem:[%s5287_s2 + $0x20] sm:$0xff]  ;;  %v3361_v19 = vld [vmem:[%s5287_s2 + $0x28] sm:$0xff]  ;;  %p4145_p6 = scmp.ne.s32.totalorder %s5243_s20, %s4144_s30  ;;  %s4216_s19 = smov [#allocation5]  }
  0x3d   : > { %335 = vmatprep.mubr.f32.mxu0 %v4213_v0  ;;  %424 = vmatprep.mubr.f32.mxu1 %v4213_v0  ;;  %v227_v17 = vld [vmem:[%s5286_s1 + $0x18] sm:$0xff]  ;;  %v3362_v20 = vld [vmem:[%s5287_s2 + $0x30] sm:$0xff]  ;;  %v3384_v22 = vld [vmem:[%s5287_s2 + $0x40] sm:$0xff]  ;;  %s4148_s5 = sshll.u32 %s4216_s19, 4  ;;  %s4149_s5 = int_to_ptr.vmem [resolvable:$false] %s4148_s5 }
  0x3e   : > { %443 = vmatprep.subr.mxu0 %v4372_v7  ;;  %532 = vmatprep.subr.mxu1 %v4374_v8  ;;  %v3363_v21 = vld [vmem:[%s5287_s2 + $0x38] sm:$0xff]  ;;  %v3385_v23 = vld [vmem:[%s5287_s2 + $0x48] sm:$0xff]  ;;  %v3386_v24 = vld [vmem:[%s5287_s2 + $0x50] sm:$0xff]  ;;  %p4146_p12 = pnand %p4145_p6, %p5298_p11  ;;  %s4150_s6 = scalar_lea.vmem %s4149_s5, 256 }
  0x3f   : > { %444 = vmatpush1.msra.mxu0 %v4378_v9  ;;  %533 = vmatpush1.msra.mxu1 %v4380_v10  ;;  %v3387_v25 = vld [vmem:[%s5287_s2 + $0x58] sm:$0xff]  ;;  %v3408_v26 = vld [vmem:[%s5287_s2 + $0x60] sm:$0xff]  ;;  %v3409_v27 = vld [vmem:[%s5287_s2 + $0x68] sm:$0xff]  ;;  %p4151_p7 = scmp.lt.s32.totalorder %s5243_s20, %s4149_s5  ;;  %p4152_p10 = scmp.lt.s32.totalorder %s4150_s6, %s4144_s30 }
  0x40   : > { %3341 = vmatmul.mubr.msk.f32.gmra.mrb[2].mxu0 %vm252_vm0, %v225_v11  ;;  %3345 = vmatmul.mubr.msk.f32.gmra.mrb[2].mxu1 %vm252_vm0, %v225_v11  ;;  %v3410_v28 = vld [vmem:[%s5287_s2 + $0x70] sm:$0xff]  ;;  %v3411_v29 = vld [vmem:[%s5287_s2 + $0x78] sm:$0xff]  ;;  %v3432_v30 = vld [vmem:[%s5287_s2 + $0x80] sm:$0xff]  ;;  %p4147_p13 = pneg %p4146_p12 }
  0x41   : > { %341 = vmatprep.mubr.f32.mxu0 %v4213_v0  ;;  %430 = vmatprep.mubr.f32.mxu1 %v4213_v0  ;;  %v3433_v31 = vld [vmem:[%s5287_s2 + $0x88] sm:$0xff]  ;;  %v3434_v32 = vld [vmem:[%s5287_s2 + $0x90] sm:$0xff]  ;;  %v3435_v33 = vld [vmem:[%s5287_s2 + $0x98] sm:$0xff]  ;;  %p4153_p2 = por %p4152_p10, %p4151_p7 }
  0x42   : > { %234 = vperm.xlu0 %3728, %v228_v12   ;;  %244 = vperm.xlu1 %3729, %v230_v13   ;;  %v3456_v34 = vld [vmem:[%s5287_s2 + $0xa0] sm:$0xff]  ;;  %v3457_v35 = vld [vmem:[%s5287_s2 + $0xa8] sm:$0xff]  ;;  %v3458_v36 = vld [vmem:[%s5287_s2 + $0xb0] sm:$0xff] }
  0x43   : > { %v3459_v37 = vld [vmem:[%s5287_s2 + $0xb8] sm:$0xff]  ;;  %p4154_p4 = pnand %p4153_p2, %p4147_p13 }
  0x44   : > { %3342 = vmatmul.mubr.msk.f32.gmra.mrb[4].mxu0 %vm252_vm0, %v226_v14  ;;  %3346 = vmatmul.mubr.msk.f32.gmra.mrb[4].mxu1 %vm252_vm0, %v226_v14 }
  0x45   : > { %347 = vmatprep.mubr.f32.mxu0 %v4213_v0  ;;  %436 = vmatprep.mubr.f32.mxu1 %v4213_v0 }
  0x46   : > { %239 = vperm.xlu0 %3728, %v229_v15   ;;  %249 = vperm.xlu1 %3729, %v231_v16  }
  0x48   : > { %3343 = vmatmul.mubr.msk.f32.gmra.mrb[6].mxu0 %vm252_vm0, %v227_v17  ;;  %3347 = vmatmul.mubr.msk.f32.gmra.mrb[6].mxu1 %vm252_vm0, %v227_v17 }
  0x49   : > { %507 = vmatprep.mubr.f32.mxu0 %v4213_v0  ;;  %596 = vmatprep.mubr.f32.mxu1 %v4213_v0 }
  0x4a   : > { %665 = vperm.xlu0 %3728, %v3360_v18   ;;  %670 = vperm.xlu1 %3729, %v3361_v19  }
  0x4c   : > { %3348 = vmatmul.mubr.msk.f32.vlgmr.msra.gmra.mrb[8].mxu0 %vm252_vm0, %v224_v6  ;;  %3352 = vmatmul.mubr.msk.f32.vlgmr.msra.gmra.mrb[8].mxu1 %vm252_vm0, %v224_v6 }
  0x4d   : > { %513 = vmatprep.mubr.f32.mxu0 %v4213_v0  ;;  %602 = vmatprep.mubr.f32.mxu1 %v4213_v0 }
  0x4e   : > { %675 = vperm.xlu0 %3728, %v3362_v20   ;;  %680 = vperm.xlu1 %3729, %v3363_v21  }
  0x50   : > { %3349 = vmatmul.mubr.msk.f32.gmra.mrb[10].mxu0 %vm252_vm0, %v225_v11  ;;  %3353 = vmatmul.mubr.msk.f32.gmra.mrb[10].mxu1 %vm252_vm0, %v225_v11 }
  0x51   : > { %519 = vmatprep.mubr.f32.mxu0 %v4213_v0  ;;  %608 = vmatprep.mubr.f32.mxu1 %v4213_v0 }
  0x52   : > { %1127 = vperm.xlu0 %3728, %v3384_v22   ;;  %1132 = vperm.xlu1 %3729, %v3385_v23  }
  0x54   : > { %3350 = vmatmul.mubr.msk.f32.gmra.mrb[12].mxu0 %vm252_vm0, %v226_v14  ;;  %3354 = vmatmul.mubr.msk.f32.gmra.mrb[12].mxu1 %vm252_vm0, %v226_v14 }
  0x55   : > { %525 = vmatprep.mubr.f32.mxu0 %v4213_v0  ;;  %614 = vmatprep.mubr.f32.mxu1 %v4213_v0 }
  0x56   : > { %1137 = vperm.xlu0 %3728, %v3386_v24   ;;  %1142 = vperm.xlu1 %3729, %v3387_v25  }
  0x58   : > { %3351 = vmatmul.mubr.msk.f32.gmra.mrb[14].mxu0 %vm252_vm0, %v227_v17  ;;  %3355 = vmatmul.mubr.msk.f32.gmra.mrb[14].mxu1 %vm252_vm0, %v227_v17 }
  0x59   : > { %759 = vmatprep.mubr.f32.mxu0 %v4213_v0  ;;  %848 = vmatprep.mubr.f32.mxu1 %v4213_v0 }
  0x5a   : > { %1557 = vperm.xlu0 %3728, %v3408_v26   ;;  %1562 = vperm.xlu1 %3729, %v3409_v27  }
  0x5e   : > { %1567 = vperm.xlu0 %3728, %v3410_v28   ;;  %1572 = vperm.xlu1 %3729, %v3411_v29  }
  0x62   : > { %2019 = vperm.xlu0 %3728, %v3432_v30   ;;  %2024 = vperm.xlu1 %3729, %v3433_v31  }
  0x66   : > { %2029 = vperm.xlu0 %3728, %v3434_v32   ;;  %2034 = vperm.xlu1 %3729, %v3435_v33  }
  0x6a   : > { %2449 = vperm.xlu0 %3728, %v3456_v34   ;;  %2454 = vperm.xlu1 %3729, %v3457_v35  }
  0x6e   : > { %2459 = vperm.xlu0 %3728, %v3458_v36   ;;  %2464 = vperm.xlu1 %3729, %v3459_v37  }
  0xc1   : > { %v4497_v38 = vpop.permute.xlu0 %234  ;;  %v4505_v48 = vpop.permute.xlu1 %244 }
  0xc5   : > { %v4503_v47 = vpop.permute.xlu0 %239  ;;  %v4515_v6 = vpop.permute.xlu1 %249 }
 0x10f   : > { %v331_v39 = vpop.f32.mrb[0].mxu0  ;;  %v420_v40 = vpop.f32.mrb[0].mxu1 }
 0x110   : > { %v332_v41 = vadd.f32 %v331_v39, %v4497_v38  ;;  %v421_v42 = vadd.f32 %v420_v40, %v4497_v38  ;;  %v333_v43 = vpop.f32.mrb[1].mxu0  ;;  %v422_v44 = vpop.f32.mrb[1].mxu1 }
 0x111   : > { %v334_v45 = vadd.f32 %v333_v43, %v4497_v38  ;;  %v423_v46 = vadd.f32 %v422_v44, %v4497_v38 }
 0x112   : > { %3730 = vtanh.f32 %v332_v41 }
 0x113   : > { %3732 = vtanh.f32 %v421_v42  ;;  %v337_v49 = vpop.f32.mrb[2].mxu0  ;;  %v426_v50 = vpop.f32.mrb[2].mxu1 }
 0x114   : > { %3734 = vtanh.f32 %v334_v45  ;;  %v338_v51 = vadd.f32 %v337_v49, %v4503_v47  ;;  %v427_v52 = vadd.f32 %v426_v50, %v4503_v47  ;;  %v339_v53 = vpop.f32.mrb[3].mxu0  ;;  %v428_v54 = vpop.f32.mrb[3].mxu1 }
 0x115   : > { %3736 = vtanh.f32 %v423_v46  ;;  %v340_v55 = vadd.f32 %v339_v53, %v4503_v47  ;;  %v429_v56 = vadd.f32 %v428_v54, %v4503_v47 }
 0x116   : > { %3738 = vtanh.f32 %v338_v51 }
 0x117   : > { %3740 = vtanh.f32 %v427_v52  ;;  %v343_v57 = vpop.f32.mrb[4].mxu0  ;;  %v432_v58 = vpop.f32.mrb[4].mxu1 }
 0x118   : > { %3742 = vtanh.f32 %v340_v55  ;;  %v344_v59 = vadd.f32 %v343_v57, %v4505_v48  ;;  %v433_v60 = vadd.f32 %v432_v58, %v4505_v48  ;;  %v345_v61 = vpop.f32.mrb[5].mxu0  ;;  %v434_v62 = vpop.f32.mrb[5].mxu1 }
 0x119   : > { %3744 = vtanh.f32 %v429_v56  ;;  %v346_v63 = vadd.f32 %v345_v61, %v4505_v48  ;;  %v435_v1 = vadd.f32 %v434_v62, %v4505_v48 }
 0x11a   : > { %3746 = vtanh.f32 %v344_v59 }
 0x11b   : > { %3748 = vtanh.f32 %v433_v60  ;;  %v349_v11 = vpop.f32.mrb[6].mxu0  ;;  %v438_v12 = vpop.f32.mrb[6].mxu1 }
 0x11c   : > { %v3731_v13 = vpop.eup %3730  ;;  %3750 = vtanh.f32 %v346_v63  ;;  %v350_v14 = vadd.f32 %v349_v11, %v4515_v6  ;;  %v439_v15 = vadd.f32 %v438_v12, %v4515_v6  ;;  %v351_v16 = vpop.f32.mrb[7].mxu0 }
 0x11d   : > { %v440_v17 = vpop.f32.mrb[7].mxu1  ;;  %v3733_v18 = vpop.eup %3732  ;;  %3752 = vtanh.f32 %v435_v1  ;;  %v352_v19 = vadd.f32 %v351_v16, %v4515_v6 }
 0x11e   : > { %v441_v20 = vadd.f32 %v440_v17, %v4515_v6  ;;  %v3735_v21 = vpop.eup %3734  ;;  %3754 = vtanh.f32 %v350_v14 }
 0x11f   : > { %v3737_v22 = vpop.eup %3736  ;;  %3756 = vtanh.f32 %v439_v15  ;;  %v509_v23 = vpop.f32.mrb[8].mxu0 }
 0x120   : > { %v598_v24 = vpop.f32.mrb[8].mxu1  ;;  %v3739_v25 = vpop.eup %3738  ;;  %3758 = vtanh.f32 %v352_v19  ;;  %v510_v26 = vadd.f32 %v509_v23, %v4497_v38 }
 0x121   : > { %v599_v27 = vadd.f32 %v598_v24, %v4497_v38  ;;  %v511_v28 = vpop.f32.mrb[9].mxu0  ;;  %v600_v29 = vpop.f32.mrb[9].mxu1  ;;  %3760 = vtanh.f32 %v441_v20  ;;  %v3489_v33 = vpack.c.bf16 %v3739_v25, %v3731_v13  ;;  %v3356_v24 = vld [vmem:[%s5286_s1 + $0x20] sm:$0xff] }
 0x122   : > { %v3741_v30 = vpop.eup %3740  ;;  %v512_v31 = vadd.f32 %v511_v28, %v4497_v38  ;;  %v601_v32 = vadd.f32 %v600_v29, %v4497_v38  ;;  %3762 = vtanh.f32 %v510_v26  ;;  %v3357_v29 = vld [vmem:[%s5286_s1 + $0x28] sm:$0xff] }
 0x123   : > { %v3743_v34 = vpop.eup %3742  ;;  %v3497_v35 = vpack.c.bf16 %v3741_v30, %v3733_v18  ;;  %3764 = vtanh.f32 %v599_v27  ;;  %v515_v37 = vpop.f32.mrb[10].mxu0 }
 0x124   : > { %v3745_v36 = vpop.eup %3744  ;;  %v604_v39 = vpop.f32.mrb[10].mxu1  ;;  %v3487_v40 = vpack.c.bf16 %v3743_v34, %v3735_v21  ;;  %3766 = vtanh.f32 %v512_v31  ;;  %v516_v42 = vadd.f32 %v515_v37, %v4503_v47  ;;  %v3358_v37 = vld [vmem:[%s5286_s1 + $0x30] sm:$0xff] }
 0x125   : > { %v3747_v41 = vpop.eup %3746  ;;  %v605_v43 = vadd.f32 %v604_v39, %v4503_v47  ;;  %v517_v44 = vpop.f32.mrb[11].mxu0  ;;  %v3495_v46 = vpack.c.bf16 %v3745_v36, %v3737_v22  ;;  %3768 = vtanh.f32 %v601_v32 }
 0x126   : > { %v606_v45 = vpop.f32.mrb[11].mxu1  ;;  %v3749_v49 = vpop.eup %3748  ;;  %v518_v38 = vadd.f32 %v517_v44, %v4503_v47  ;;  %3488 = vmatprep.subr.bf16.mxu0 %v3487_v40  ;;  %3770 = vtanh.f32 %v516_v42  ;;  %v3359_v44 = vld [vmem:[%s5286_s1 + $0x38] sm:$0xff] }
 0x127   : > { %v607_v50 = vadd.f32 %v606_v45, %v4503_v47  ;;  %v3751_v51 = vpop.eup %3750  ;;  %3496 = vmatprep.subr.bf16.mxu1 %v3495_v46  ;;  %3490 = vmatpush1.bf16.msra.mxu0 %v3489_v33  ;;  %3772 = vtanh.f32 %v605_v43  ;;  %v521_v53 = vpop.f32.mrb[12].mxu0 }
 0x128   : > { %v3753_v52 = vpop.eup %3752  ;;  %3498 = vmatpush1.bf16.msra.mxu1 %v3497_v35  ;;  %v610_v54 = vpop.f32.mrb[12].mxu1  ;;  %3774 = vtanh.f32 %v518_v38  ;;  %v522_v56 = vadd.f32 %v521_v53, %v4505_v48 }
 0x129   : > { %v3755_v55 = vpop.eup %3754  ;;  %v611_v57 = vadd.f32 %v610_v54, %v4505_v48  ;;  %v523_v58 = vpop.f32.mrb[13].mxu0  ;;  %3776 = vtanh.f32 %v607_v50 }
 0x12a   : > { %v612_v59 = vpop.f32.mrb[13].mxu1  ;;  %v3757_v60 = vpop.eup %3756  ;;  %v524_v47 = vadd.f32 %v523_v58, %v4505_v48  ;;  %v3493_v62 = vpack.c.bf16 %v3755_v55, %v3747_v41  ;;  %3778 = vtanh.f32 %v522_v56 }
 0x12b   : > { %v613_v61 = vadd.f32 %v612_v59, %v4505_v48  ;;  %v3759_v63 = vpop.eup %3758  ;;  %v3501_v1 = vpack.c.bf16 %v3757_v60, %v3749_v49  ;;  %3780 = vtanh.f32 %v611_v57  ;;  %v527_v12 = vpop.f32.mrb[14].mxu0 }
 0x12c   : > { %v3761_v11 = vpop.eup %3760  ;;  %v616_v13 = vpop.f32.mrb[14].mxu1  ;;  %v3491_v14 = vpack.c.bf16 %v3759_v63, %v3751_v51  ;;  %3782 = vtanh.f32 %v524_v47  ;;  %v528_v16 = vadd.f32 %v527_v12, %v4515_v6 }
 0x12d   : > { %v3763_v15 = vpop.eup %3762  ;;  %v617_v17 = vadd.f32 %v616_v13, %v4515_v6  ;;  %v529_v18 = vpop.f32.mrb[15].mxu0  ;;  %v3499_v20 = vpack.c.bf16 %v3761_v11, %v3753_v52  ;;  %3784 = vtanh.f32 %v613_v61 }
 0x12e   : > { %v618_v19 = vpop.f32.mrb[15].mxu1  ;;  %v3765_v21 = vpop.eup %3764  ;;  %v530_v48 = vadd.f32 %v529_v18, %v4515_v6  ;;  %3492 = vmatprep.subr.bf16.mxu0 %v3491_v14  ;;  %3786 = vtanh.f32 %v528_v16 }
 0x12f   : > { %v619_v22 = vadd.f32 %v618_v19, %v4515_v6  ;;  %v3767_v23 = vpop.eup %3766  ;;  %3500 = vmatprep.subr.bf16.mxu1 %v3499_v20  ;;  %3494 = vmatpush1.bf16.msra.mxu0 %v3493_v62  ;;  %3788 = vtanh.f32 %v617_v17  ;;  %v4581_v50 = vpop.permute.xlu0 %665 }
 0x130   : > { %v3769_v25 = vpop.eup %3768  ;;  %3502 = vmatpush1.bf16.msra.mxu1 %v3501_v1  ;;  %3790 = vtanh.f32 %v530_v48  ;;  %v4587_v59 = vpop.permute.xlu1 %670 }
 0x131   : > { %v3771_v26 = vpop.eup %3770  ;;  %3792 = vtanh.f32 %v619_v22 }
 0x132   : > { %v3773_v27 = vpop.eup %3772  ;;  %3364 = vmatmul.mubr.msk.f32.vlgmr.msra.gmra.mrb[16].mxu0 %vm252_vm0, %v3356_v24  ;;  %v3505_v28 = vpack.c.bf16 %v3771_v26, %v3763_v15 }
 0x133   : > { %v3775_v6 = vpop.eup %3774  ;;  %3368 = vmatmul.mubr.msk.f32.vlgmr.msra.gmra.mrb[16].mxu1 %vm252_vm0, %v3356_v24  ;;  %765 = vmatprep.mubr.f32.mxu0 %v4213_v0  ;;  %v3513_v30 = vpack.c.bf16 %v3773_v27, %v3765_v21  ;;  %v4593_v13 = vpop.permute.xlu0 %675 }
 0x134   : > { %v3777_v31 = vpop.eup %3776  ;;  %854 = vmatprep.mubr.f32.mxu1 %v4213_v0  ;;  %v3503_v32 = vpack.c.bf16 %v3775_v6, %v3767_v23  ;;  %v4599_v48 = vpop.permute.xlu1 %680 }
 0x135   : > { %v3779_v33 = vpop.eup %3778  ;;  %v3511_v34 = vpack.c.bf16 %v3777_v31, %v3769_v25 }
 0x136   : > { %v3781_v35 = vpop.eup %3780  ;;  %3365 = vmatmul.mubr.msk.f32.gmra.mrb[18].mxu0 %vm252_vm0, %v3357_v29  ;;  %3504 = vmatprep.subr.bf16.mxu0 %v3503_v32 }
 0x137   : > { %v3783_v36 = vpop.eup %3782  ;;  %3369 = vmatmul.mubr.msk.f32.gmra.mrb[18].mxu1 %vm252_vm0, %v3357_v29  ;;  %3512 = vmatprep.subr.bf16.mxu1 %v3511_v34 }
 0x138   : > { %v3785_v39 = vpop.eup %3784  ;;  %3506 = vmatpush1.bf16.msra.mxu0 %v3505_v28  ;;  %3514 = vmatpush1.bf16.msra.mxu1 %v3513_v30 }
 0x139   : > { %v3787_v40 = vpop.eup %3786  ;;  %771 = vmatprep.mubr.f32.mxu0 %v4213_v0  ;;  %860 = vmatprep.mubr.f32.mxu1 %v4213_v0 }
 0x13a   : > { %v3789_v41 = vpop.eup %3788  ;;  %3366 = vmatmul.mubr.msk.f32.gmra.mrb[20].mxu0 %vm252_vm0, %v3358_v37  ;;  %v3509_v42 = vpack.c.bf16 %v3787_v40, %v3779_v33 }
 0x13b   : > { %v3791_v43 = vpop.eup %3790  ;;  %3370 = vmatmul.mubr.msk.f32.gmra.mrb[20].mxu1 %vm252_vm0, %v3358_v37  ;;  %777 = vmatprep.mubr.f32.mxu0 %v4213_v0  ;;  %v3517_v45 = vpack.c.bf16 %v3789_v41, %v3781_v35 }
 0x13c   : > { %v3793_v46 = vpop.eup %3792  ;;  %866 = vmatprep.mubr.f32.mxu1 %v4213_v0  ;;  %v3507_v49 = vpack.c.bf16 %v3791_v43, %v3783_v36 }
 0x13d   : > { %v3515_v38 = vpack.c.bf16 %v3793_v46, %v3785_v39 }
 0x13e   : > { %3367 = vmatmul.mubr.msk.f32.gmra.mrb[22].mxu0 %vm252_vm0, %v3359_v44  ;;  %3508 = vmatprep.subr.bf16.mxu0 %v3507_v49 }
 0x13f   : > { %3371 = vmatmul.mubr.msk.f32.gmra.mrb[22].mxu1 %vm252_vm0, %v3359_v44  ;;  %3516 = vmatprep.subr.bf16.mxu1 %v3515_v38 }
 0x140   : > { %3510 = vmatpush1.bf16.msra.mxu0 %v3509_v42  ;;  %3518 = vmatpush1.bf16.msra.mxu1 %v3517_v45 }
 0x141   : > { %937 = vmatprep.mubr.f32.mxu0 %v4213_v0  ;;  %1026 = vmatprep.mubr.f32.mxu1 %v4213_v0 }
 0x143   : > { %3372 = vmatmul.mubr.msk.f32.vlgmr.msra.gmra.mrb[24].mxu0 %vm252_vm0, %v3356_v24  ;;  %3376 = vmatmul.mubr.msk.f32.vlgmr.msra.gmra.mrb[24].mxu1 %vm252_vm0, %v3356_v24 }
 0x144   : > { %943 = vmatprep.mubr.f32.mxu0 %v4213_v0  ;;  %1032 = vmatprep.mubr.f32.mxu1 %v4213_v0 }
 0x147   : > { %3373 = vmatmul.mubr.msk.f32.gmra.mrb[26].mxu0 %vm252_vm0, %v3357_v29  ;;  %3377 = vmatmul.mubr.msk.f32.gmra.mrb[26].mxu1 %vm252_vm0, %v3357_v29 }
 0x148   : > { %949 = vmatprep.mubr.f32.mxu0 %v4213_v0  ;;  %1038 = vmatprep.mubr.f32.mxu1 %v4213_v0 }
 0x14b   : > { %3374 = vmatmul.mubr.msk.f32.gmra.mrb[28].mxu0 %vm252_vm0, %v3358_v37  ;;  %3378 = vmatmul.mubr.msk.f32.gmra.mrb[28].mxu1 %vm252_vm0, %v3358_v37 }
 0x14c   : > { %955 = vmatprep.mubr.f32.mxu0 %v4213_v0  ;;  %1044 = vmatprep.mubr.f32.mxu1 %v4213_v0 }
 0x14f   : > { %3375 = vmatmul.mubr.msk.f32.gmra.mrb[30].mxu0 %vm252_vm0, %v3359_v44  ;;  %3379 = vmatmul.mubr.msk.f32.gmra.mrb[30].mxu1 %vm252_vm0, %v3359_v44 }
 0x150   : > { %1221 = vmatprep.mubr.f32.mxu0 %v4213_v0  ;;  %1310 = vmatprep.mubr.f32.mxu1 %v4213_v0 }
 0x205   : > { %v761_v51 = vpop.f32.mrb[16].mxu0 }
 0x206   : > { %v762_v52 = vadd.f32 %v761_v51, %v4581_v50  ;;  %v850_v53 = vpop.f32.mrb[16].mxu1  ;;  %v763_v54 = vpop.f32.mrb[17].mxu0 }
 0x207   : > { %v851_v55 = vadd.f32 %v850_v53, %v4581_v50  ;;  %v764_v56 = vadd.f32 %v763_v54, %v4581_v50  ;;  %v852_v57 = vpop.f32.mrb[17].mxu1 }
 0x208   : > { %3794 = vtanh.f32 %v762_v52  ;;  %v853_v58 = vadd.f32 %v852_v57, %v4581_v50 }
 0x209   : > { %3796 = vtanh.f32 %v851_v55  ;;  %v767_v60 = vpop.f32.mrb[18].mxu0 }
 0x20a   : > { %3798 = vtanh.f32 %v764_v56  ;;  %v768_v47 = vadd.f32 %v767_v60, %v4587_v59  ;;  %v856_v61 = vpop.f32.mrb[18].mxu1  ;;  %v769_v62 = vpop.f32.mrb[19].mxu0 }
 0x20b   : > { %3800 = vtanh.f32 %v853_v58  ;;  %v857_v63 = vadd.f32 %v856_v61, %v4587_v59  ;;  %v770_v1 = vadd.f32 %v769_v62, %v4587_v59  ;;  %v858_v11 = vpop.f32.mrb[19].mxu1 }
 0x20c   : > { %3802 = vtanh.f32 %v768_v47  ;;  %v859_v12 = vadd.f32 %v858_v11, %v4587_v59 }
 0x20d   : > { %3804 = vtanh.f32 %v857_v63  ;;  %v773_v14 = vpop.f32.mrb[20].mxu0 }
 0x20e   : > { %3806 = vtanh.f32 %v770_v1  ;;  %v774_v15 = vadd.f32 %v773_v14, %v4593_v13  ;;  %v862_v16 = vpop.f32.mrb[20].mxu1  ;;  %v775_v17 = vpop.f32.mrb[21].mxu0 }
 0x20f   : > { %3808 = vtanh.f32 %v859_v12  ;;  %v863_v18 = vadd.f32 %v862_v16, %v4593_v13  ;;  %v776_v19 = vadd.f32 %v775_v17, %v4593_v13  ;;  %v864_v20 = vpop.f32.mrb[21].mxu1 }
 0x210   : > { %3810 = vtanh.f32 %v774_v15  ;;  %v865_v21 = vadd.f32 %v864_v20, %v4593_v13 }
 0x211   : > { %3812 = vtanh.f32 %v863_v18  ;;  %v779_v22 = vpop.f32.mrb[22].mxu0 }
 0x212   : > { %v3795_v23 = vpop.eup %3794  ;;  %3814 = vtanh.f32 %v776_v19  ;;  %v780_v24 = vadd.f32 %v779_v22, %v4599_v48  ;;  %v868_v25 = vpop.f32.mrb[22].mxu1 }
 0x213   : > { %v781_v26 = vpop.f32.mrb[23].mxu0  ;;  %v3797_v27 = vpop.eup %3796  ;;  %3816 = vtanh.f32 %v865_v21  ;;  %v869_v28 = vadd.f32 %v868_v25, %v4599_v48  ;;  %v4622_v49 = vadd.f32 %v3795_v23, %v4361_v4 }
 0x214   : > { %v782_v6 = vadd.f32 %v781_v26, %v4599_v48  ;;  %v870_v29 = vpop.f32.mrb[23].mxu1  ;;  %v3799_v30 = vpop.eup %3798  ;;  %3818 = vtanh.f32 %v780_v24 }
 0x215   : > { %v871_v31 = vadd.f32 %v870_v29, %v4599_v48  ;;  %v3801_v32 = vpop.eup %3800  ;;  %3820 = vtanh.f32 %v869_v28  ;;  %v4612_v42 = vadd.f32 %v3799_v30, %v4357_v2  ;;  %v4629_v2 = vadd.f32 %v3797_v27, %v4365_v5 }
 0x216   : > { %v4605_v33 = vpop.eup %3802  ;;  %3822 = vtanh.f32 %v782_v6  ;;  %v939_v34 = vpop.f32.mrb[24].mxu0  ;;  %v4619_v46 = vadd.f32 %v3801_v32, %v4359_v3 }
 0x217   : > { %v1028_v35 = vpop.f32.mrb[24].mxu1  ;;  %v4607_v36 = vpop.eup %3804  ;;  %3824 = vtanh.f32 %v871_v31  ;;  %v940_v37 = vadd.f32 %v939_v34, %v4581_v50  ;;  %v3521_v4 = vpack.c.bf16 %v4605_v33, %v4622_v49  ;;  %v3380_v34 = vld [vmem:[%s5286_s1 + $0x40] sm:$0xff] }
 0x218   : > { %v1029_v39 = vadd.f32 %v1028_v35, %v4581_v50  ;;  %v941_v40 = vpop.f32.mrb[25].mxu0  ;;  %v1030_v41 = vpop.f32.mrb[25].mxu1  ;;  %v3529_v58 = vpack.c.bf16 %v4607_v36, %v4629_v2 }
 0x219   : > { %v4614_v43 = vpop.eup %3806  ;;  %v942_v44 = vadd.f32 %v941_v40, %v4581_v50  ;;  %v1031_v45 = vadd.f32 %v1030_v41, %v4581_v50  ;;  %3826 = vtanh.f32 %v940_v37 }
 0x21a   : > { %v4624_v38 = vpop.eup %3808  ;;  %v3519_v51 = vpack.c.bf16 %v4614_v43, %v4612_v42  ;;  %3828 = vtanh.f32 %v1029_v39  ;;  %v945_v53 = vpop.f32.mrb[26].mxu0 }
 0x21b   : > { %v4631_v52 = vpop.eup %3810  ;;  %v1034_v50 = vpop.f32.mrb[26].mxu1  ;;  %v3527_v3 = vpack.c.bf16 %v4624_v38, %v4619_v46  ;;  %3830 = vtanh.f32 %v942_v44  ;;  %v946_v55 = vadd.f32 %v945_v53, %v4587_v59 }
 0x21c   : > { %v4637_v54 = vpop.eup %3812  ;;  %v1035_v56 = vadd.f32 %v1034_v50, %v4587_v59  ;;  %v947_v5 = vpop.f32.mrb[27].mxu0  ;;  %3520 = vmatprep.subr.bf16.mxu0 %v3519_v51  ;;  %3832 = vtanh.f32 %v1031_v45 }
 0x21d   : > { %v1036_v57 = vpop.f32.mrb[27].mxu1  ;;  %v4643_v60 = vpop.eup %3814  ;;  %v948_v47 = vadd.f32 %v947_v5, %v4587_v59  ;;  %3528 = vmatprep.subr.bf16.mxu1 %v3527_v3  ;;  %3522 = vmatpush1.bf16.msra.mxu0 %v3521_v4  ;;  %3834 = vtanh.f32 %v946_v55 }
 0x21e   : > { %v1037_v61 = vadd.f32 %v1036_v57, %v4587_v59  ;;  %v4647_v62 = vpop.eup %3816  ;;  %3530 = vmatpush1.bf16.msra.mxu1 %v3529_v58  ;;  %3836 = vtanh.f32 %v1035_v56  ;;  %v951_v1 = vpop.f32.mrb[28].mxu0  ;;  %v3383_v58 = vld [vmem:[%s5286_s1 + $0x58] sm:$0xff] }
 0x21f   : > { %v4649_v63 = vpop.eup %3818  ;;  %v1040_v11 = vpop.f32.mrb[28].mxu1  ;;  %3838 = vtanh.f32 %v948_v47  ;;  %v952_v14 = vadd.f32 %v951_v1, %v4593_v13 }
 0x220   : > { %v4651_v12 = vpop.eup %3820  ;;  %v953_v15 = vpop.f32.mrb[29].mxu0  ;;  %3840 = vtanh.f32 %v1037_v61  ;;  %v3525_v24 = vpack.c.bf16 %v4649_v63, %v4631_v52  ;;  %v1041_v37 = vadd.f32 %v1040_v11, %v4593_v13 }
 0x221   : > { %v1042_v16 = vpop.f32.mrb[29].mxu1  ;;  %v4654_v17 = vpop.eup %3822  ;;  %v954_v59 = vadd.f32 %v953_v15, %v4593_v13  ;;  %3842 = vtanh.f32 %v952_v14  ;;  %v3533_v29 = vpack.c.bf16 %v4651_v12, %v4637_v54 }
 0x222   : > { %v1043_v18 = vadd.f32 %v1042_v16, %v4593_v13  ;;  %v4658_v19 = vpop.eup %3824  ;;  %v3523_v20 = vpack.c.bf16 %v4654_v17, %v4643_v60  ;;  %v957_v21 = vpop.f32.mrb[30].mxu0  ;;  %v3381_v13 = vld [vmem:[%s5286_s1 + $0x48] sm:$0xff] }
 0x223   : > { %v1046_v22 = vpop.f32.mrb[30].mxu1  ;;  %v3531_v23 = vpack.c.bf16 %v4658_v19, %v4647_v62  ;;  %v3827_v25 = vpop.eup %3826  ;;  %3844 = vtanh.f32 %v954_v59  ;;  %v958_v26 = vadd.f32 %v957_v21, %v4599_v48 }
 0x224   : > { %v1047_v27 = vadd.f32 %v1046_v22, %v4599_v48  ;;  %v959_v28 = vpop.f32.mrb[31].mxu0  ;;  %v1048_v6 = vpop.f32.mrb[31].mxu1  ;;  %3524 = vmatprep.subr.bf16.mxu0 %v3523_v20  ;;  %3846 = vtanh.f32 %v1043_v18  ;;  %v4696_v51 = vadd.f32 %v3827_v25, %v4378_v9 }
 0x225   : > { %v3829_v30 = vpop.eup %3828  ;;  %v960_v31 = vadd.f32 %v959_v28, %v4599_v48  ;;  %v1049_v32 = vadd.f32 %v1048_v6, %v4599_v48  ;;  %3532 = vmatprep.subr.bf16.mxu1 %v3531_v23  ;;  %3526 = vmatpush1.bf16.msra.mxu0 %v3525_v24  ;;  %3848 = vtanh.f32 %v958_v26  ;;  %v4769_v59 = vpop.permute.xlu0 %1127 }
 0x226   : > { %v3831_v35 = vpop.eup %3830  ;;  %3534 = vmatpush1.bf16.msra.mxu1 %v3533_v29  ;;  %3850 = vtanh.f32 %v1047_v27  ;;  %v4703_v3 = vadd.f32 %v3829_v30, %v4380_v10  ;;  %v3382_v10 = vld [vmem:[%s5286_s1 + $0x50] sm:$0xff]  ;;  %v4775_v27 = vpop.permute.xlu1 %1132 }
 0x227   : > { %v3833_v39 = vpop.eup %3832  ;;  %3852 = vtanh.f32 %v960_v31  ;;  %v4687_v48 = vadd.f32 %v3831_v35, %v4372_v7 }
 0x228   : > { %v4676_v40 = vpop.eup %3834  ;;  %3388 = vmatmul.mubr.msk.f32.vlgmr.msra.gmra.mrb[32].mxu0 %vm252_vm0, %v3380_v34  ;;  %3854 = vtanh.f32 %v1049_v32  ;;  %v4693_v45 = vadd.f32 %v3833_v39, %v4374_v8 }
 0x229   : > { %v4679_v41 = vpop.eup %3836  ;;  %3392 = vmatmul.mubr.msk.f32.vlgmr.msra.gmra.mrb[32].mxu1 %vm252_vm0, %v3380_v34  ;;  %1227 = vmatprep.mubr.f32.mxu0 %v4213_v0  ;;  %3856 = vtanh.f32 %v1041_v37  ;;  %v3537_v8 = vpack.c.bf16 %v4676_v40, %v4696_v51  ;;  %v4781_v37 = vpop.permute.xlu0 %1137 }
 0x22a   : > { %v4689_v44 = vpop.eup %3838  ;;  %1316 = vmatprep.mubr.f32.mxu1 %v4213_v0  ;;  %v3545_v9 = vpack.c.bf16 %v4679_v41, %v4703_v3 }
 0x22b   : > { %v4698_v53 = vpop.eup %3840  ;;  %v3535_v50 = vpack.c.bf16 %v4689_v44, %v4687_v48 }
 0x22c   : > { %3389 = vmatmul.mubr.msk.f32.gmra.mrb[34].mxu0 %vm252_vm0, %v3381_v13  ;;  %v3543_v7 = vpack.c.bf16 %v4698_v53, %v4693_v45  ;;  %v4710_v4 = vpop.eup %3842 }
 0x22d   : > { %3393 = vmatmul.mubr.msk.f32.gmra.mrb[34].mxu1 %vm252_vm0, %v3381_v13  ;;  %3536 = vmatprep.subr.bf16.mxu0 %v3535_v50  ;;  %v4718_v55 = vpop.eup %3844 }
 0x22e   : > { %3544 = vmatprep.subr.bf16.mxu1 %v3543_v7  ;;  %3538 = vmatpush1.bf16.msra.mxu0 %v3537_v8  ;;  %v4720_v56 = vpop.eup %3846 }
 0x22f   : > { %3546 = vmatpush1.bf16.msra.mxu1 %v3545_v9  ;;  %1233 = vmatprep.mubr.f32.mxu0 %v4213_v0  ;;  %v4723_v5 = vpop.eup %3848 }
 0x230   : > { %1322 = vmatprep.mubr.f32.mxu1 %v4213_v0  ;;  %3390 = vmatmul.mubr.msk.f32.gmra.mrb[36].mxu0 %vm252_vm0, %v3382_v10  ;;  %v4727_v57 = vpop.eup %3850  ;;  %v3541_v15 = vpack.c.bf16 %v4723_v5, %v4710_v4 }
 0x231   : > { %3394 = vmatmul.mubr.msk.f32.gmra.mrb[36].mxu1 %vm252_vm0, %v3382_v10  ;;  %1239 = vmatprep.mubr.f32.mxu0 %v4213_v0  ;;  %v4734_v47 = vpop.eup %3852 }
 0x232   : > { %1328 = vmatprep.mubr.f32.mxu1 %v4213_v0  ;;  %v4737_v61 = vpop.eup %3854  ;;  %v3539_v1 = vpack.c.bf16 %v4734_v47, %v4718_v55 }
 0x233   : > { %v4741_v11 = vpop.eup %3856  ;;  %v3547_v14 = vpack.c.bf16 %v4737_v61, %v4720_v56 }
 0x234   : > { %3391 = vmatmul.mubr.msk.f32.gmra.mrb[38].mxu0 %vm252_vm0, %v3383_v58  ;;  %3540 = vmatprep.subr.bf16.mxu0 %v3539_v1  ;;  %v3549_v16 = vpack.c.bf16 %v4727_v57, %v4741_v11  ;;  %v4787_v1 = vpop.permute.xlu1 %1142 }
 0x235   : > { %3395 = vmatmul.mubr.msk.f32.gmra.mrb[38].mxu1 %vm252_vm0, %v3383_v58  ;;  %3548 = vmatprep.subr.bf16.mxu1 %v3547_v14 }
 0x236   : > { %3542 = vmatpush1.bf16.msra.mxu0 %v3541_v15  ;;  %3550 = vmatpush1.bf16.msra.mxu1 %v3549_v16 }
 0x237   : > { %1399 = vmatprep.mubr.f32.mxu0 %v4213_v0  ;;  %1488 = vmatprep.mubr.f32.mxu1 %v4213_v0 }
 0x239   : > { %3396 = vmatmul.mubr.msk.f32.vlgmr.msra.gmra.mrb[40].mxu0 %vm252_vm0, %v3380_v34  ;;  %3400 = vmatmul.mubr.msk.f32.vlgmr.msra.gmra.mrb[40].mxu1 %vm252_vm0, %v3380_v34 }
 0x23a   : > { %1405 = vmatprep.mubr.f32.mxu0 %v4213_v0  ;;  %1494 = vmatprep.mubr.f32.mxu1 %v4213_v0 }
 0x23d   : > { %3397 = vmatmul.mubr.msk.f32.gmra.mrb[42].mxu0 %vm252_vm0, %v3381_v13  ;;  %3401 = vmatmul.mubr.msk.f32.gmra.mrb[42].mxu1 %vm252_vm0, %v3381_v13 }
 0x23e   : > { %1411 = vmatprep.mubr.f32.mxu0 %v4213_v0  ;;  %1500 = vmatprep.mubr.f32.mxu1 %v4213_v0 }
 0x241   : > { %3398 = vmatmul.mubr.msk.f32.gmra.mrb[44].mxu0 %vm252_vm0, %v3382_v10  ;;  %3402 = vmatmul.mubr.msk.f32.gmra.mrb[44].mxu1 %vm252_vm0, %v3382_v10 }
 0x242   : > { %1417 = vmatprep.mubr.f32.mxu0 %v4213_v0  ;;  %1506 = vmatprep.mubr.f32.mxu1 %v4213_v0 }
 0x245   : > { %3399 = vmatmul.mubr.msk.f32.gmra.mrb[46].mxu0 %vm252_vm0, %v3383_v58  ;;  %3403 = vmatmul.mubr.msk.f32.gmra.mrb[46].mxu1 %vm252_vm0, %v3383_v58 }
 0x246   : > { %1651 = vmatprep.mubr.f32.mxu0 %v4213_v0  ;;  %1740 = vmatprep.mubr.f32.mxu1 %v4213_v0 }
 0x2fb   : > { %v1223_v18 = vpop.f32.mrb[32].mxu0 }
 0x2fc   : > { %v1224_v20 = vadd.f32 %v1223_v18, %v4769_v59  ;;  %v1312_v21 = vpop.f32.mrb[32].mxu1  ;;  %v1225_v22 = vpop.f32.mrb[33].mxu0 }
 0x2fd   : > { %v1313_v23 = vadd.f32 %v1312_v21, %v4769_v59  ;;  %v1226_v24 = vadd.f32 %v1225_v22, %v4769_v59  ;;  %v1314_v25 = vpop.f32.mrb[33].mxu1 }
 0x2fe   : > { %3858 = vtanh.f32 %v1224_v20  ;;  %v1315_v26 = vadd.f32 %v1314_v25, %v4769_v59 }
 0x2ff   : > { %3860 = vtanh.f32 %v1313_v23  ;;  %v1229_v28 = vpop.f32.mrb[34].mxu0 }
 0x300   : > { %3862 = vtanh.f32 %v1226_v24  ;;  %v1230_v6 = vadd.f32 %v1229_v28, %v4775_v27  ;;  %v1318_v29 = vpop.f32.mrb[34].mxu1  ;;  %v1231_v30 = vpop.f32.mrb[35].mxu0 }
 0x301   : > { %3864 = vtanh.f32 %v1315_v26  ;;  %v1319_v31 = vadd.f32 %v1318_v29, %v4775_v27  ;;  %v1232_v32 = vadd.f32 %v1231_v30, %v4775_v27  ;;  %v1320_v34 = vpop.f32.mrb[35].mxu1 }
 0x302   : > { %3866 = vtanh.f32 %v1230_v6  ;;  %v1321_v35 = vadd.f32 %v1320_v34, %v4775_v27 }
 0x303   : > { %3868 = vtanh.f32 %v1319_v31  ;;  %v1235_v39 = vpop.f32.mrb[36].mxu0 }
 0x304   : > { %3870 = vtanh.f32 %v1232_v32  ;;  %v1236_v13 = vadd.f32 %v1235_v39, %v4781_v37  ;;  %v1324_v50 = vpop.f32.mrb[36].mxu1  ;;  %v1237_v7 = vpop.f32.mrb[37].mxu0 }
 0x305   : > { %3872 = vtanh.f32 %v1321_v35  ;;  %v1325_v8 = vadd.f32 %v1324_v50, %v4781_v37  ;;  %v1238_v9 = vadd.f32 %v1237_v7, %v4781_v37  ;;  %v1326_v10 = vpop.f32.mrb[37].mxu1 }
 0x306   : > { %3874 = vtanh.f32 %v1236_v13  ;;  %v1327_v58 = vadd.f32 %v1326_v10, %v4781_v37 }
 0x307   : > { %3876 = vtanh.f32 %v1325_v8  ;;  %v1241_v14 = vpop.f32.mrb[38].mxu0 }
 0x308   : > { %v3859_v15 = vpop.eup %3858  ;;  %3878 = vtanh.f32 %v1238_v9  ;;  %v1242_v16 = vadd.f32 %v1241_v14, %v4787_v1  ;;  %v1330_v18 = vpop.f32.mrb[38].mxu1 }
 0x309   : > { %v1243_v20 = vpop.f32.mrb[39].mxu0  ;;  %v3861_v21 = vpop.eup %3860  ;;  %3880 = vtanh.f32 %v1327_v58  ;;  %v1331_v22 = vadd.f32 %v1330_v18, %v4787_v1 }
 0x30a   : > { %v1244_v23 = vadd.f32 %v1243_v20, %v4787_v1  ;;  %v1332_v24 = vpop.f32.mrb[39].mxu1  ;;  %v3863_v25 = vpop.eup %3862  ;;  %3882 = vtanh.f32 %v1242_v16 }
 0x30b   : > { %v1333_v26 = vadd.f32 %v1332_v24, %v4787_v1  ;;  %v3865_v28 = vpop.eup %3864  ;;  %3884 = vtanh.f32 %v1331_v22 }
 0x30c   : > { %v3867_v6 = vpop.eup %3866  ;;  %3886 = vtanh.f32 %v1244_v23  ;;  %v1401_v29 = vpop.f32.mrb[40].mxu0 }
 0x30d   : > { %v3869_v30 = vpop.eup %3868  ;;  %3888 = vtanh.f32 %v1333_v26  ;;  %v1402_v31 = vadd.f32 %v1401_v29, %v4769_v59  ;;  %v1490_v32 = vpop.f32.mrb[40].mxu1  ;;  %v3553_v35 = vpack.c.bf16 %v3867_v6, %v3859_v15 }
 0x30e   : > { %v1403_v34 = vpop.f32.mrb[41].mxu0  ;;  %v3871_v39 = vpop.eup %3870  ;;  %v1491_v13 = vadd.f32 %v1490_v32, %v4769_v59  ;;  %v3561_v8 = vpack.c.bf16 %v3869_v30, %v3861_v21 }
 0x30f   : > { %v1404_v50 = vadd.f32 %v1403_v34, %v4769_v59  ;;  %v1492_v7 = vpop.f32.mrb[41].mxu1  ;;  %v3873_v9 = vpop.eup %3872  ;;  %3890 = vtanh.f32 %v1402_v31  ;;  %v3551_v58 = vpack.c.bf16 %v3871_v39, %v3863_v25 }
 0x310   : > { %v1493_v10 = vadd.f32 %v1492_v7, %v4769_v59  ;;  %v3875_v14 = vpop.eup %3874  ;;  %3892 = vtanh.f32 %v1491_v13  ;;  %v1407_v16 = vpop.f32.mrb[42].mxu0  ;;  %v3559_v18 = vpack.c.bf16 %v3873_v9, %v3865_v28 }
 0x311   : > { %v3877_v20 = vpop.eup %3876  ;;  %3894 = vtanh.f32 %v1404_v50  ;;  %v1408_v15 = vadd.f32 %v1407_v16, %v4775_v27  ;;  %v1496_v22 = vpop.f32.mrb[42].mxu1  ;;  %3552 = vmatprep.subr.bf16.mxu0 %v3551_v58 }
 0x312   : > { %v1409_v23 = vpop.f32.mrb[43].mxu0  ;;  %v3879_v24 = vpop.eup %3878  ;;  %3896 = vtanh.f32 %v1493_v10  ;;  %v1497_v21 = vadd.f32 %v1496_v22, %v4775_v27  ;;  %3560 = vmatprep.subr.bf16.mxu1 %v3559_v18  ;;  %3554 = vmatpush1.bf16.msra.mxu0 %v3553_v35 }
 0x313   : > { %v1410_v26 = vadd.f32 %v1409_v23, %v4775_v27  ;;  %v1498_v6 = vpop.f32.mrb[43].mxu1  ;;  %v3881_v59 = vpop.eup %3880  ;;  %3898 = vtanh.f32 %v1408_v15  ;;  %3562 = vmatpush1.bf16.msra.mxu1 %v3561_v8 }
 0x314   : > { %v1499_v25 = vadd.f32 %v1498_v6, %v4775_v27  ;;  %v3883_v28 = vpop.eup %3882  ;;  %3900 = vtanh.f32 %v1497_v21  ;;  %v1413_v29 = vpop.f32.mrb[44].mxu0 }
 0x315   : > { %v3885_v30 = vpop.eup %3884  ;;  %3902 = vtanh.f32 %v1410_v26  ;;  %v1414_v31 = vadd.f32 %v1413_v29, %v4781_v37  ;;  %v1502_v32 = vpop.f32.mrb[44].mxu1  ;;  %v3557_v39 = vpack.c.bf16 %v3883_v28, %v3875_v14  ;;  %v3405_v29 = vld [vmem:[%s5286_s1 + $0x68] sm:$0xff] }
 0x316   : > { %v1415_v34 = vpop.f32.mrb[45].mxu0  ;;  %v3887_v13 = vpop.eup %3886  ;;  %3904 = vtanh.f32 %v1499_v25  ;;  %v1503_v50 = vadd.f32 %v1502_v32, %v4781_v37  ;;  %v3565_v9 = vpack.c.bf16 %v3885_v30, %v3877_v20 }
 0x317   : > { %v1416_v35 = vadd.f32 %v1415_v34, %v4781_v37  ;;  %v1504_v7 = vpop.f32.mrb[45].mxu1  ;;  %v3889_v27 = vpop.eup %3888  ;;  %3906 = vtanh.f32 %v1414_v31  ;;  %v3555_v10 = vpack.c.bf16 %v3887_v13, %v3879_v24 }
 0x318   : > { %v1505_v8 = vadd.f32 %v1504_v7, %v4781_v37  ;;  %3908 = vtanh.f32 %v1503_v50  ;;  %v1419_v58 = vpop.f32.mrb[46].mxu0  ;;  %v3563_v16 = vpack.c.bf16 %v3889_v27, %v3881_v59  ;;  %v1508_v15 = vpop.f32.mrb[46].mxu1  ;;  %v3404_v37 = vld [vmem:[%s5286_s1 + $0x60] sm:$0xff] }
 0x319   : > { %v3891_v18 = vpop.eup %3890  ;;  %3910 = vtanh.f32 %v1416_v35  ;;  %v1420_v14 = vadd.f32 %v1419_v58, %v4787_v1  ;;  %v1421_v22 = vpop.f32.mrb[47].mxu0  ;;  %3556 = vmatprep.subr.bf16.mxu0 %v3555_v10  ;;  %v1509_v21 = vadd.f32 %v1508_v15, %v4787_v1  ;;  %v3406_v35 = vld [vmem:[%s5286_s1 + $0x70] sm:$0xff]  ;;  %v3407_v10 = vld [vmem:[%s5286_s1 + $0x78] sm:$0xff] }
 0x31a   : > { %v3893_v23 = vpop.eup %3892  ;;  %3912 = vtanh.f32 %v1505_v8  ;;  %v1422_v20 = vadd.f32 %v1421_v22, %v4787_v1  ;;  %v1510_v26 = vpop.f32.mrb[47].mxu1  ;;  %3564 = vmatprep.subr.bf16.mxu1 %v3563_v16  ;;  %3558 = vmatpush1.bf16.msra.mxu0 %v3557_v39 }
 0x31b   : > { %v3895_v24 = vpop.eup %3894  ;;  %3914 = vtanh.f32 %v1420_v14  ;;  %v1511_v6 = vadd.f32 %v1510_v26, %v4787_v1  ;;  %3566 = vmatpush1.bf16.msra.mxu1 %v3565_v9 }
 0x31c   : > { %v3897_v59 = vpop.eup %3896  ;;  %3916 = vtanh.f32 %v1509_v21 }
 0x31d   : > { %v3899_v25 = vpop.eup %3898  ;;  %3918 = vtanh.f32 %v1422_v20  ;;  %3412 = vmatmul.mubr.msk.f32.vlgmr.msra.gmra.mrb[48].mxu0 %vm252_vm0, %v3404_v37 }
 0x31e   : > { %v3901_v28 = vpop.eup %3900  ;;  %3920 = vtanh.f32 %v1511_v6  ;;  %3416 = vmatmul.mubr.msk.f32.vlgmr.msra.gmra.mrb[48].mxu1 %vm252_vm0, %v3404_v37  ;;  %1657 = vmatprep.mubr.f32.mxu0 %v4213_v0  ;;  %v3569_v30 = vpack.c.bf16 %v3899_v25, %v3891_v18 }
 0x31f   : > { %v3903_v31 = vpop.eup %3902  ;;  %1746 = vmatprep.mubr.f32.mxu1 %v4213_v0  ;;  %v3577_v1 = vpack.c.bf16 %v3901_v28, %v3893_v23  ;;  %v4853_v23 = vpop.permute.xlu0 %1557 }
 0x320   : > { %v3905_v32 = vpop.eup %3904  ;;  %v3567_v34 = vpack.c.bf16 %v3903_v31, %v3895_v24  ;;  %v4859_v28 = vpop.permute.xlu1 %1562 }
 0x321   : > { %v3907_v39 = vpop.eup %3906  ;;  %3413 = vmatmul.mubr.msk.f32.gmra.mrb[50].mxu0 %vm252_vm0, %v3405_v29  ;;  %v3575_v13 = vpack.c.bf16 %v3905_v32, %v3897_v59 }
 0x322   : > { %v3909_v50 = vpop.eup %3908  ;;  %3417 = vmatmul.mubr.msk.f32.gmra.mrb[50].mxu1 %vm252_vm0, %v3405_v29  ;;  %3568 = vmatprep.subr.bf16.mxu0 %v3567_v34 }
 0x323   : > { %v3911_v7 = vpop.eup %3910  ;;  %3576 = vmatprep.subr.bf16.mxu1 %v3575_v13  ;;  %3570 = vmatpush1.bf16.msra.mxu0 %v3569_v30 }
 0x324   : > { %v3913_v9 = vpop.eup %3912  ;;  %3578 = vmatpush1.bf16.msra.mxu1 %v3577_v1  ;;  %1663 = vmatprep.mubr.f32.mxu0 %v4213_v0 }
 0x325   : > { %v3915_v27 = vpop.eup %3914  ;;  %1752 = vmatprep.mubr.f32.mxu1 %v4213_v0  ;;  %3414 = vmatmul.mubr.msk.f32.gmra.mrb[52].mxu0 %vm252_vm0, %v3406_v35 }
 0x326   : > { %v3917_v8 = vpop.eup %3916  ;;  %3418 = vmatmul.mubr.msk.f32.gmra.mrb[52].mxu1 %vm252_vm0, %v3406_v35  ;;  %1669 = vmatprep.mubr.f32.mxu0 %v4213_v0  ;;  %v3573_v58 = vpack.c.bf16 %v3915_v27, %v3907_v39 }
 0x327   : > { %v3919_v16 = vpop.eup %3918  ;;  %1758 = vmatprep.mubr.f32.mxu1 %v4213_v0  ;;  %v3581_v18 = vpack.c.bf16 %v3917_v8, %v3909_v50  ;;  %v4865_v50 = vpop.permute.xlu0 %1567 }
 0x328   : > { %v3921_v14 = vpop.eup %3920  ;;  %v3571_v15 = vpack.c.bf16 %v3919_v16, %v3911_v7 }
 0x329   : > { %3415 = vmatmul.mubr.msk.f32.gmra.mrb[54].mxu0 %vm252_vm0, %v3407_v10  ;;  %v3579_v22 = vpack.c.bf16 %v3921_v14, %v3913_v9 }
 0x32a   : > { %3419 = vmatmul.mubr.msk.f32.gmra.mrb[54].mxu1 %vm252_vm0, %v3407_v10  ;;  %3572 = vmatprep.subr.bf16.mxu0 %v3571_v15 }
 0x32b   : > { %3580 = vmatprep.subr.bf16.mxu1 %v3579_v22  ;;  %3574 = vmatpush1.bf16.msra.mxu0 %v3573_v58 }
 0x32c   : > { %3582 = vmatpush1.bf16.msra.mxu1 %v3581_v18  ;;  %1829 = vmatprep.mubr.f32.mxu0 %v4213_v0  ;;  %v4871_v18 = vpop.permute.xlu1 %1572 }
 0x32d   : > { %1918 = vmatprep.mubr.f32.mxu1 %v4213_v0 }
 0x32e   : > { %3420 = vmatmul.mubr.msk.f32.vlgmr.msra.gmra.mrb[56].mxu0 %vm252_vm0, %v3404_v37 }
 0x32f   : > { %3424 = vmatmul.mubr.msk.f32.vlgmr.msra.gmra.mrb[56].mxu1 %vm252_vm0, %v3404_v37  ;;  %1835 = vmatprep.mubr.f32.mxu0 %v4213_v0 }
 0x330   : > { %1924 = vmatprep.mubr.f32.mxu1 %v4213_v0 }
 0x332   : > { %3421 = vmatmul.mubr.msk.f32.gmra.mrb[58].mxu0 %vm252_vm0, %v3405_v29 }
 0x333   : > { %3425 = vmatmul.mubr.msk.f32.gmra.mrb[58].mxu1 %vm252_vm0, %v3405_v29  ;;  %1841 = vmatprep.mubr.f32.mxu0 %v4213_v0 }
 0x334   : > { %1930 = vmatprep.mubr.f32.mxu1 %v4213_v0 }
 0x336   : > { %3422 = vmatmul.mubr.msk.f32.gmra.mrb[60].mxu0 %vm252_vm0, %v3406_v35 }
 0x337   : > { %3426 = vmatmul.mubr.msk.f32.gmra.mrb[60].mxu1 %vm252_vm0, %v3406_v35  ;;  %1847 = vmatprep.mubr.f32.mxu0 %v4213_v0 }
 0x338   : > { %1936 = vmatprep.mubr.f32.mxu1 %v4213_v0 }
 0x33a   : > { %3423 = vmatmul.mubr.msk.f32.gmra.mrb[62].mxu0 %vm252_vm0, %v3407_v10 }
 0x33b   : > { %3427 = vmatmul.mubr.msk.f32.gmra.mrb[62].mxu1 %vm252_vm0, %v3407_v10  ;;  %2113 = vmatprep.mubr.f32.mxu0 %v4213_v0 }
 0x33c   : > { %2202 = vmatprep.mubr.f32.mxu1 %v4213_v0 }
 0x3f0   : > { %v1653_v21 = vpop.f32.mrb[48].mxu0 }
 0x3f1   : > { %v1654_v20 = vadd.f32 %v1653_v21, %v4853_v23  ;;  %v1742_v26 = vpop.f32.mrb[48].mxu1  ;;  %v1655_v37 = vpop.f32.mrb[49].mxu0 }
 0x3f2   : > { %v1743_v24 = vadd.f32 %v1742_v26, %v4853_v23  ;;  %v1656_v6 = vadd.f32 %v1655_v37, %v4853_v23  ;;  %v1744_v59 = vpop.f32.mrb[49].mxu1 }
 0x3f3   : > { %3922 = vtanh.f32 %v1654_v20  ;;  %v1745_v25 = vadd.f32 %v1744_v59, %v4853_v23 }
 0x3f4   : > { %3924 = vtanh.f32 %v1743_v24  ;;  %v1659_v29 = vpop.f32.mrb[50].mxu0 }
 0x3f5   : > { %3926 = vtanh.f32 %v1656_v6  ;;  %v1660_v30 = vadd.f32 %v1659_v29, %v4859_v28  ;;  %v1748_v31 = vpop.f32.mrb[50].mxu1  ;;  %v1661_v1 = vpop.f32.mrb[51].mxu0 }
 0x3f6   : > { %3928 = vtanh.f32 %v1745_v25  ;;  %v1749_v32 = vadd.f32 %v1748_v31, %v4859_v28  ;;  %v1662_v34 = vadd.f32 %v1661_v1, %v4859_v28  ;;  %v1750_v39 = vpop.f32.mrb[51].mxu1 }
 0x3f7   : > { %3930 = vtanh.f32 %v1660_v30  ;;  %v1751_v13 = vadd.f32 %v1750_v39, %v4859_v28 }
 0x3f8   : > { %3932 = vtanh.f32 %v1749_v32  ;;  %v1665_v35 = vpop.f32.mrb[52].mxu0 }
 0x3f9   : > { %3934 = vtanh.f32 %v1662_v34  ;;  %v1666_v7 = vadd.f32 %v1665_v35, %v4865_v50  ;;  %v1754_v9 = vpop.f32.mrb[52].mxu1  ;;  %v1667_v27 = vpop.f32.mrb[53].mxu0 }
 0x3fa   : > { %3936 = vtanh.f32 %v1751_v13  ;;  %v1755_v8 = vadd.f32 %v1754_v9, %v4865_v50  ;;  %v1668_v10 = vadd.f32 %v1667_v27, %v4865_v50  ;;  %v1756_v58 = vpop.f32.mrb[53].mxu1 }
 0x3fb   : > { %3938 = vtanh.f32 %v1666_v7  ;;  %v1757_v16 = vadd.f32 %v1756_v58, %v4865_v50 }
 0x3fc   : > { %3940 = vtanh.f32 %v1755_v8  ;;  %v1671_v14 = vpop.f32.mrb[54].mxu0 }
 0x3fd   : > { %v3923_v15 = vpop.eup %3922  ;;  %3942 = vtanh.f32 %v1668_v10  ;;  %v1672_v22 = vadd.f32 %v1671_v14, %v4871_v18  ;;  %v1760_v21 = vpop.f32.mrb[54].mxu1 }
 0x3fe   : > { %v1673_v20 = vpop.f32.mrb[55].mxu0  ;;  %v3925_v26 = vpop.eup %3924  ;;  %3944 = vtanh.f32 %v1757_v16  ;;  %v1761_v37 = vadd.f32 %v1760_v21, %v4871_v18  ;;  %v4887_v10 = vadd.f32 %v3923_v15, %v4622_v49 }
 0x3ff   : > { %v1674_v24 = vadd.f32 %v1673_v20, %v4871_v18  ;;  %v1762_v6 = vpop.f32.mrb[55].mxu1  ;;  %v3927_v59 = vpop.eup %3926  ;;  %3946 = vtanh.f32 %v1672_v22  ;;  %v4903_v49 = vadd.f32 %v3925_v26, %v4629_v2 }
 0x400   : > { %v1763_v25 = vadd.f32 %v1762_v6, %v4871_v18  ;;  %v3929_v29 = vpop.eup %3928  ;;  %3948 = vtanh.f32 %v1761_v37  ;;  %v4884_v8 = vadd.f32 %v3927_v59, %v4612_v42 }
 0x401   : > { %v3931_v30 = vpop.eup %3930  ;;  %3950 = vtanh.f32 %v1674_v24  ;;  %v1831_v31 = vpop.f32.mrb[56].mxu0  ;;  %v4897_v20 = vadd.f32 %v3929_v29, %v4619_v46 }
 0x402   : > { %v3933_v1 = vpop.eup %3932  ;;  %3952 = vtanh.f32 %v1763_v25  ;;  %v1832_v32 = vadd.f32 %v1831_v31, %v4853_v23  ;;  %v1920_v34 = vpop.f32.mrb[56].mxu1  ;;  %v4879_v13 = vadd.f32 %v3931_v30, %v4605_v33 }
 0x403   : > { %v1833_v39 = vpop.f32.mrb[57].mxu0  ;;  %v3935_v35 = vpop.eup %3934  ;;  %v1921_v7 = vadd.f32 %v1920_v34, %v4853_v23  ;;  %v4894_v33 = vadd.f32 %v3933_v1, %v4607_v36 }
 0x404   : > { %v1834_v9 = vadd.f32 %v1833_v39, %v4853_v23  ;;  %v1922_v27 = vpop.f32.mrb[57].mxu1  ;;  %v3937_v58 = vpop.eup %3936  ;;  %3954 = vtanh.f32 %v1832_v32  ;;  %v4891_v14 = vadd.f32 %v3935_v35, %v4614_v43  ;;  %v3585_v24 = vpack.c.bf16 %v4879_v13, %v4887_v10 }
 0x405   : > { %v1923_v16 = vadd.f32 %v1922_v27, %v4853_v23  ;;  %v3939_v22 = vpop.eup %3938  ;;  %3956 = vtanh.f32 %v1921_v7  ;;  %v1837_v21 = vpop.f32.mrb[58].mxu0  ;;  %v4900_v42 = vadd.f32 %v3937_v58, %v4624_v38  ;;  %v3593_v29 = vpack.c.bf16 %v4894_v33, %v4903_v49 }
 0x406   : > { %v3941_v15 = vpop.eup %3940  ;;  %3958 = vtanh.f32 %v1834_v9  ;;  %v1838_v43 = vadd.f32 %v1837_v21, %v4859_v28  ;;  %v1926_v23 = vpop.f32.mrb[58].mxu1  ;;  %v3583_v36 = vpack.c.bf16 %v4891_v14, %v4884_v8  ;;  %v4919_v35 = vadd.f32 %v3939_v22, %v4631_v52 }
 0x407   : > { %v1839_v37 = vpop.f32.mrb[59].mxu0  ;;  %v3943_v46 = vpop.eup %3942  ;;  %3960 = vtanh.f32 %v1923_v16  ;;  %v1927_v38 = vadd.f32 %v1926_v23, %v4859_v28  ;;  %v3591_v26 = vpack.c.bf16 %v4900_v42, %v4897_v20 }
 0x408   : > { %v1840_v6 = vadd.f32 %v1839_v37, %v4859_v28  ;;  %v1928_v2 = vpop.f32.mrb[59].mxu1  ;;  %v3945_v59 = vpop.eup %3944  ;;  %3962 = vtanh.f32 %v1838_v43  ;;  %3584 = vmatprep.subr.bf16.mxu0 %v3583_v36  ;;  %v4927_v16 = vadd.f32 %v3943_v46, %v4643_v60  ;;  %v4943_v60 = vadd.f32 %v3941_v15, %v4637_v54 }
 0x409   : > { %v1929_v25 = vadd.f32 %v1928_v2, %v4859_v28  ;;  %v3947_v30 = vpop.eup %3946  ;;  %3964 = vtanh.f32 %v1927_v38  ;;  %3592 = vmatprep.subr.bf16.mxu1 %v3591_v26  ;;  %v1843_v31 = vpop.f32.mrb[60].mxu0  ;;  %3586 = vmatpush1.bf16.msra.mxu0 %v3585_v24  ;;  %v4937_v23 = vadd.f32 %v3945_v59, %v4647_v62 }
 0x40a   : > { %v3949_v1 = vpop.eup %3948  ;;  %3966 = vtanh.f32 %v1840_v6  ;;  %v1844_v32 = vadd.f32 %v1843_v31, %v4865_v50  ;;  %v1932_v34 = vpop.f32.mrb[60].mxu1  ;;  %3594 = vmatpush1.bf16.msra.mxu1 %v3593_v29  ;;  %v4922_v28 = vadd.f32 %v3947_v30, %v4649_v63 }
 0x40b   : > { %v1845_v39 = vpop.f32.mrb[61].mxu0  ;;  %v3951_v7 = vpop.eup %3950  ;;  %3968 = vtanh.f32 %v1929_v25  ;;  %v1933_v9 = vadd.f32 %v1932_v34, %v4865_v50  ;;  %v4934_v63 = vadd.f32 %v3949_v1, %v4651_v12  ;;  %v4960_v25 = vld [vmem:[%s5286_s1 + $0x80] sm:$0xff] }
 0x40c   : > { %v1846_v27 = vadd.f32 %v1845_v39, %v4865_v50  ;;  %v1934_v58 = vpop.f32.mrb[61].mxu1  ;;  %v3953_v21 = vpop.eup %3952  ;;  %3970 = vtanh.f32 %v1844_v32  ;;  %v4931_v52 = vadd.f32 %v3951_v7, %v4654_v17  ;;  %v3589_v46 = vpack.c.bf16 %v4922_v28, %v4919_v35  ;;  %v3429_v32 = vld [vmem:[%s5286_s1 + $0x88] sm:$0xff] }
 0x40d   : > { %v1935_v43 = vadd.f32 %v1934_v58, %v4865_v50  ;;  %3972 = vtanh.f32 %v1933_v9  ;;  %v1849_v22 = vpop.f32.mrb[62].mxu0  ;;  %v4940_v37 = vadd.f32 %v3953_v21, %v4658_v19  ;;  %v3597_v26 = vpack.c.bf16 %v4934_v63, %v4943_v60 }
 0x40e   : > { %v3955_v36 = vpop.eup %3954  ;;  %3974 = vtanh.f32 %v1846_v27  ;;  %v1850_v50 = vadd.f32 %v1849_v22, %v4871_v18  ;;  %v1938_v17 = vpop.f32.mrb[62].mxu1  ;;  %v3587_v12 = vpack.c.bf16 %v4931_v52, %v4927_v16 }
 0x40f   : > { %v1851_v24 = vpop.f32.mrb[63].mxu0  ;;  %v3957_v62 = vpop.eup %3956  ;;  %3976 = vtanh.f32 %v1935_v43  ;;  %v1939_v19 = vadd.f32 %v1938_v17, %v4871_v18  ;;  %v3595_v15 = vpack.c.bf16 %v4940_v37, %v4937_v23  ;;  %v4990_v58 = vadd.f32 %v3955_v36, %v4696_v51 }
 0x410   : > { %v1852_v38 = vadd.f32 %v1851_v24, %v4871_v18  ;;  %v1940_v54 = vpop.f32.mrb[63].mxu1  ;;  %v3959_v6 = vpop.eup %3958  ;;  %3978 = vtanh.f32 %v1850_v50  ;;  %3588 = vmatprep.subr.bf16.mxu0 %v3587_v12  ;;  %v4995_v21 = vadd.f32 %v3957_v62, %v4703_v3  ;;  %v3430_v3 = vld [vmem:[%s5286_s1 + $0x90] sm:$0xff]  ;;  %v3431_v12 = vld [vmem:[%s5286_s1 + $0x98] sm:$0xff] }
 0x411   : > { %v1941_v2 = vadd.f32 %v1940_v54, %v4871_v18  ;;  %v3961_v59 = vpop.eup %3960  ;;  %3980 = vtanh.f32 %v1939_v19  ;;  %3596 = vmatprep.subr.bf16.mxu1 %v3595_v15  ;;  %3590 = vmatpush1.bf16.msra.mxu0 %v3589_v46  ;;  %v4974_v34 = vadd.f32 %v3959_v6, %v4687_v48 }
 0x412   : > { %v3963_v29 = vpop.eup %3962  ;;  %3982 = vtanh.f32 %v1852_v38  ;;  %3598 = vmatpush1.bf16.msra.mxu1 %v3597_v26  ;;  %v4984_v9 = vadd.f32 %v3961_v59, %v4693_v45 }
 0x413   : > { %v3965_v30 = vpop.eup %3964  ;;  %3984 = vtanh.f32 %v1941_v2  ;;  %v4965_v18 = vadd.f32 %v3963_v29, %v4676_v40 }
 0x414   : > { %v3967_v31 = vpop.eup %3966  ;;  %3436 = vmatmul.mubr.msk.f32.vlgmr.msra.gmra.mrb[64].mxu0 %vm252_vm0, %v4960_v25  ;;  %v4980_v7 = vadd.f32 %v3965_v30, %v4679_v41  ;;  %v5077_v30 = vpop.permute.xlu1 %2024 }
 0x415   : > { %v3969_v1 = vpop.eup %3968  ;;  %3440 = vmatmul.mubr.msk.f32.vlgmr.msra.gmra.mrb[64].mxu1 %vm252_vm0, %v4960_v25  ;;  %2119 = vmatprep.mubr.f32.mxu0 %v4213_v0  ;;  %v4977_v39 = vadd.f32 %v3967_v31, %v4689_v44 }
 0x416   : > { %v3971_v40 = vpop.eup %3970  ;;  %2208 = vmatprep.mubr.f32.mxu1 %v4213_v0  ;;  %v4987_v27 = vadd.f32 %v3969_v1, %v4698_v53  ;;  %v3601_v53 = vpack.c.bf16 %v4965_v18, %v4990_v58  ;;  %v3609_v51 = vpack.c.bf16 %v4980_v7, %v4995_v21 }
 0x417   : > { %v3973_v48 = vpop.eup %3972  ;;  %v3599_v44 = vpack.c.bf16 %v4977_v39, %v4974_v34  ;;  %v5036_v54 = vadd.f32 %v3971_v40, %v4710_v4 }
 0x418   : > { %v3975_v41 = vpop.eup %3974  ;;  %3437 = vmatmul.mubr.msk.f32.gmra.mrb[66].mxu0 %vm252_vm0, %v3429_v32  ;;  %v3607_v45 = vpack.c.bf16 %v4987_v27, %v4984_v9 }
 0x419   : > { %v3977_v43 = vpop.eup %3976  ;;  %3441 = vmatmul.mubr.msk.f32.gmra.mrb[66].mxu1 %vm252_vm0, %v3429_v32  ;;  %3600 = vmatprep.subr.bf16.mxu0 %v3599_v44  ;;  %v5020_v46 = vadd.f32 %v3975_v41, %v4718_v55 }
 0x41a   : > { %v3979_v22 = vpop.eup %3978  ;;  %3608 = vmatprep.subr.bf16.mxu1 %v3607_v45  ;;  %3602 = vmatpush1.bf16.msra.mxu0 %v3601_v53 }
 0x41b   : > { %v3981_v36 = vpop.eup %3980  ;;  %3610 = vmatpush1.bf16.msra.mxu1 %v3609_v51  ;;  %2125 = vmatprep.mubr.f32.mxu0 %v4213_v0  ;;  %v5012_v17 = vadd.f32 %v3979_v22, %v4723_v5  ;;  %v5030_v5 = vadd.f32 %v3977_v43, %v4720_v56 }
 0x41c   : > { %v3983_v50 = vpop.eup %3982  ;;  %2214 = vmatprep.mubr.f32.mxu1 %v4213_v0  ;;  %3438 = vmatmul.mubr.msk.f32.gmra.mrb[68].mxu0 %vm252_vm0, %v3430_v3  ;;  %v5026_v19 = vadd.f32 %v3981_v36, %v4727_v57 }
 0x41d   : > { %v3985_v24 = vpop.eup %3984  ;;  %3442 = vmatmul.mubr.msk.f32.gmra.mrb[68].mxu1 %vm252_vm0, %v3430_v3  ;;  %2131 = vmatprep.mubr.f32.mxu0 %v4213_v0  ;;  %v5023_v62 = vadd.f32 %v3983_v50, %v4734_v47  ;;  %v5041_v47 = vadd.f32 %v3973_v48, %v4741_v11  ;;  %v3605_v56 = vpack.c.bf16 %v5012_v17, %v5036_v54 }
 0x41e   : > { %2220 = vmatprep.mubr.f32.mxu1 %v4213_v0  ;;  %v5033_v38 = vadd.f32 %v3985_v24, %v4737_v61  ;;  %v5071_v61 = vpop.permute.xlu0 %2019 }
 0x41f   : > { %v3603_v55 = vpack.c.bf16 %v5023_v62, %v5020_v46  ;;  %v3613_v4 = vpack.c.bf16 %v5026_v19, %v5041_v47 }
 0x420   : > { %3439 = vmatmul.mubr.msk.f32.gmra.mrb[70].mxu0 %vm252_vm0, %v3431_v12  ;;  %v3611_v57 = vpack.c.bf16 %v5033_v38, %v5030_v5 }
 0x421   : > { %3443 = vmatmul.mubr.msk.f32.gmra.mrb[70].mxu1 %vm252_vm0, %v3431_v12  ;;  %3604 = vmatprep.subr.bf16.mxu0 %v3603_v55  ;;  %v5089_v55 = vpop.permute.xlu1 %2034 }
 0x422   : > { %3612 = vmatprep.subr.bf16.mxu1 %v3611_v57  ;;  %3606 = vmatpush1.bf16.msra.mxu0 %v3605_v56  ;;  %v5083_v53 = vpop.permute.xlu0 %2029 }
 0x423   : > { %3614 = vmatpush1.bf16.msra.mxu1 %v3613_v4  ;;  %2291 = vmatprep.mubr.f32.mxu0 %v4213_v0 }
 0x424   : > { %2380 = vmatprep.mubr.f32.mxu1 %v4213_v0 }
 0x425   : > { %3444 = vmatmul.mubr.msk.f32.vlgmr.msra.gmra.mrb[72].mxu0 %vm252_vm0, %v4960_v25 }
 0x426   : > { %3448 = vmatmul.mubr.msk.f32.vlgmr.msra.gmra.mrb[72].mxu1 %vm252_vm0, %v4960_v25  ;;  %2297 = vmatprep.mubr.f32.mxu0 %v4213_v0 }
 0x427   : > { %2386 = vmatprep.mubr.f32.mxu1 %v4213_v0 }
 0x429   : > { %3445 = vmatmul.mubr.msk.f32.gmra.mrb[74].mxu0 %vm252_vm0, %v3429_v32 }
 0x42a   : > { %3449 = vmatmul.mubr.msk.f32.gmra.mrb[74].mxu1 %vm252_vm0, %v3429_v32  ;;  %2303 = vmatprep.mubr.f32.mxu0 %v4213_v0 }
 0x42b   : > { %2392 = vmatprep.mubr.f32.mxu1 %v4213_v0 }
 0x42d   : > { %3446 = vmatmul.mubr.msk.f32.gmra.mrb[76].mxu0 %vm252_vm0, %v3430_v3 }
 0x42e   : > { %3450 = vmatmul.mubr.msk.f32.gmra.mrb[76].mxu1 %vm252_vm0, %v3430_v3  ;;  %2309 = vmatprep.mubr.f32.mxu0 %v4213_v0 }
 0x42f   : > { %2398 = vmatprep.mubr.f32.mxu1 %v4213_v0 }
 0x431   : > { %3447 = vmatmul.mubr.msk.f32.gmra.mrb[78].mxu0 %vm252_vm0, %v3431_v12 }
 0x432   : > { %3451 = vmatmul.mubr.msk.f32.gmra.mrb[78].mxu1 %vm252_vm0, %v3431_v12  ;;  %2543 = vmatprep.mubr.f32.mxu0 %v4213_v0 }
 0x433   : > { %2632 = vmatprep.mubr.f32.mxu1 %v4213_v0 }
 0x4e7   : > { %v2115_v11 = vpop.f32.mrb[64].mxu0 }
 0x4e8   : > { %v2116_v15 = vadd.f32 %v2115_v11, %v5071_v61  ;;  %v2204_v6 = vpop.f32.mrb[64].mxu1  ;;  %v2117_v2 = vpop.f32.mrb[65].mxu0 }
 0x4e9   : > { %v2205_v26 = vadd.f32 %v2204_v6, %v5071_v61  ;;  %v2118_v59 = vadd.f32 %v2117_v2, %v5071_v61  ;;  %v2206_v25 = vpop.f32.mrb[65].mxu1 }
 0x4ea   : > { %3986 = vtanh.f32 %v2116_v15  ;;  %v2207_v29 = vadd.f32 %v2206_v25, %v5071_v61 }
 0x4eb   : > { %3988 = vtanh.f32 %v2205_v26  ;;  %v2121_v31 = vpop.f32.mrb[66].mxu0 }
 0x4ec   : > { %3990 = vtanh.f32 %v2118_v59  ;;  %v2122_v1 = vadd.f32 %v2121_v31, %v5077_v30  ;;  %v2210_v32 = vpop.f32.mrb[66].mxu1  ;;  %v2123_v40 = vpop.f32.mrb[67].mxu0 }
 0x4ed   : > { %3992 = vtanh.f32 %v2207_v29  ;;  %v2211_v48 = vadd.f32 %v2210_v32, %v5077_v30  ;;  %v2124_v44 = vadd.f32 %v2123_v40, %v5077_v30  ;;  %v2212_v41 = vpop.f32.mrb[67].mxu1 }
 0x4ee   : > { %3994 = vtanh.f32 %v2122_v1  ;;  %v2213_v45 = vadd.f32 %v2212_v41, %v5077_v30 }
 0x4ef   : > { %3996 = vtanh.f32 %v2211_v48  ;;  %v2127_v43 = vpop.f32.mrb[68].mxu0 }
 0x4f0   : > { %3998 = vtanh.f32 %v2124_v44  ;;  %v2128_v51 = vadd.f32 %v2127_v43, %v5083_v53  ;;  %v2216_v3 = vpop.f32.mrb[68].mxu1  ;;  %v2129_v22 = vpop.f32.mrb[69].mxu0 }
 0x4f1   : > { %4000 = vtanh.f32 %v2213_v45  ;;  %v2217_v36 = vadd.f32 %v2216_v3, %v5083_v53  ;;  %v2130_v50 = vadd.f32 %v2129_v22, %v5083_v53  ;;  %v2218_v24 = vpop.f32.mrb[69].mxu1 }
 0x4f2   : > { %4002 = vtanh.f32 %v2128_v51  ;;  %v2219_v12 = vadd.f32 %v2218_v24, %v5083_v53 }
 0x4f3   : > { %4004 = vtanh.f32 %v2217_v36  ;;  %v2133_v57 = vpop.f32.mrb[70].mxu0 }
 0x4f4   : > { %v3987_v56 = vpop.eup %3986  ;;  %4006 = vtanh.f32 %v2130_v50  ;;  %v2134_v4 = vadd.f32 %v2133_v57, %v5089_v55  ;;  %v2222_v11 = vpop.f32.mrb[70].mxu1 }
 0x4f5   : > { %v2135_v15 = vpop.f32.mrb[71].mxu0  ;;  %v3989_v6 = vpop.eup %3988  ;;  %4008 = vtanh.f32 %v2219_v12  ;;  %v2223_v2 = vadd.f32 %v2222_v11, %v5089_v55 }
 0x4f6   : > { %v2136_v26 = vadd.f32 %v2135_v15, %v5089_v55  ;;  %v2224_v59 = vpop.f32.mrb[71].mxu1  ;;  %v3991_v25 = vpop.eup %3990  ;;  %4010 = vtanh.f32 %v2134_v4 }
 0x4f7   : > { %v2225_v29 = vadd.f32 %v2224_v59, %v5089_v55  ;;  %v3993_v31 = vpop.eup %3992  ;;  %4012 = vtanh.f32 %v2223_v2 }
 0x4f8   : > { %v3995_v1 = vpop.eup %3994  ;;  %4014 = vtanh.f32 %v2136_v26  ;;  %v2293_v32 = vpop.f32.mrb[72].mxu0 }
 0x4f9   : > { %v3997_v40 = vpop.eup %3996  ;;  %4016 = vtanh.f32 %v2225_v29  ;;  %v2294_v48 = vadd.f32 %v2293_v32, %v5071_v61  ;;  %v2382_v44 = vpop.f32.mrb[72].mxu1  ;;  %v3617_v45 = vpack.c.bf16 %v3995_v1, %v3987_v56 }
 0x4fa   : > { %v2295_v41 = vpop.f32.mrb[73].mxu0  ;;  %v3999_v43 = vpop.eup %3998  ;;  %v2383_v51 = vadd.f32 %v2382_v44, %v5071_v61  ;;  %v3625_v36 = vpack.c.bf16 %v3997_v40, %v3989_v6 }
 0x4fb   : > { %v2296_v3 = vadd.f32 %v2295_v41, %v5071_v61  ;;  %v2384_v22 = vpop.f32.mrb[73].mxu1  ;;  %v4001_v50 = vpop.eup %4000  ;;  %4018 = vtanh.f32 %v2294_v48  ;;  %v3615_v12 = vpack.c.bf16 %v3999_v43, %v3991_v25 }
 0x4fc   : > { %v2385_v24 = vadd.f32 %v2384_v22, %v5071_v61  ;;  %v4003_v57 = vpop.eup %4002  ;;  %4020 = vtanh.f32 %v2383_v51  ;;  %v2299_v4 = vpop.f32.mrb[74].mxu0  ;;  %v3623_v11 = vpack.c.bf16 %v4001_v50, %v3993_v31 }
 0x4fd   : > { %v4005_v15 = vpop.eup %4004  ;;  %4022 = vtanh.f32 %v2296_v3  ;;  %v2300_v56 = vadd.f32 %v2299_v4, %v5077_v30  ;;  %v2388_v2 = vpop.f32.mrb[74].mxu1  ;;  %3616 = vmatprep.subr.bf16.mxu0 %v3615_v12 }
 0x4fe   : > { %v2301_v26 = vpop.f32.mrb[75].mxu0  ;;  %v4007_v59 = vpop.eup %4006  ;;  %4024 = vtanh.f32 %v2385_v24  ;;  %v2389_v6 = vadd.f32 %v2388_v2, %v5077_v30  ;;  %3624 = vmatprep.subr.bf16.mxu1 %v3623_v11  ;;  %3618 = vmatpush1.bf16.msra.mxu0 %v3617_v45 }
 0x4ff   : > { %v2302_v29 = vadd.f32 %v2301_v26, %v5077_v30  ;;  %v2390_v1 = vpop.f32.mrb[75].mxu1  ;;  %v4009_v61 = vpop.eup %4008  ;;  %4026 = vtanh.f32 %v2300_v56  ;;  %3626 = vmatpush1.bf16.msra.mxu1 %v3625_v36 }
 0x500   : > { %v2391_v25 = vadd.f32 %v2390_v1, %v5077_v30  ;;  %v4011_v31 = vpop.eup %4010  ;;  %4028 = vtanh.f32 %v2389_v6  ;;  %v2305_v32 = vpop.f32.mrb[76].mxu0 }
 0x501   : > { %v4013_v40 = vpop.eup %4012  ;;  %4030 = vtanh.f32 %v2302_v29  ;;  %v2306_v48 = vadd.f32 %v2305_v32, %v5083_v53  ;;  %v2394_v44 = vpop.f32.mrb[76].mxu1  ;;  %v3621_v43 = vpack.c.bf16 %v4011_v31, %v4003_v57  ;;  %v3453_v32 = vld [vmem:[%s5286_s1 + $0xa8] sm:$0xff] }
 0x502   : > { %v2307_v41 = vpop.f32.mrb[77].mxu0  ;;  %v4015_v51 = vpop.eup %4014  ;;  %4032 = vtanh.f32 %v2391_v25  ;;  %v2395_v3 = vadd.f32 %v2394_v44, %v5083_v53  ;;  %v3629_v50 = vpack.c.bf16 %v4013_v40, %v4005_v15 }
 0x503   : > { %v2308_v45 = vadd.f32 %v2307_v41, %v5083_v53  ;;  %v2396_v22 = vpop.f32.mrb[77].mxu1  ;;  %v4017_v30 = vpop.eup %4016  ;;  %4034 = vtanh.f32 %v2306_v48  ;;  %v3619_v24 = vpack.c.bf16 %v4015_v51, %v4007_v59 }
 0x504   : > { %v2397_v36 = vadd.f32 %v2396_v22, %v5083_v53  ;;  %4036 = vtanh.f32 %v2395_v3  ;;  %v2311_v12 = vpop.f32.mrb[78].mxu0  ;;  %v3627_v4 = vpack.c.bf16 %v4017_v30, %v4009_v61  ;;  %v3452_v53 = vld [vmem:[%s5286_s1 + $0xa0] sm:$0xff] }
 0x505   : > { %v4019_v11 = vpop.eup %4018  ;;  %4038 = vtanh.f32 %v2308_v45  ;;  %v2312_v57 = vadd.f32 %v2311_v12, %v5089_v55  ;;  %v2400_v56 = vpop.f32.mrb[78].mxu1  ;;  %3620 = vmatprep.subr.bf16.mxu0 %v3619_v24  ;;  %v3454_v45 = vld [vmem:[%s5286_s1 + $0xb0] sm:$0xff]  ;;  %v3455_v24 = vld [vmem:[%s5286_s1 + $0xb8] sm:$0xff] }
 0x506   : > { %v2313_v2 = vpop.f32.mrb[79].mxu0  ;;  %v4021_v26 = vpop.eup %4020  ;;  %4040 = vtanh.f32 %v2397_v36  ;;  %v2401_v6 = vadd.f32 %v2400_v56, %v5089_v55  ;;  %3628 = vmatprep.subr.bf16.mxu1 %v3627_v4  ;;  %3622 = vmatpush1.bf16.msra.mxu0 %v3621_v43 }
 0x507   : > { %v2314_v15 = vadd.f32 %v2313_v2, %v5089_v55  ;;  %v2402_v29 = vpop.f32.mrb[79].mxu1  ;;  %v4023_v59 = vpop.eup %4022  ;;  %4042 = vtanh.f32 %v2312_v57  ;;  %3630 = vmatpush1.bf16.msra.mxu1 %v3629_v50 }
 0x508   : > { %v2403_v1 = vadd.f32 %v2402_v29, %v5089_v55  ;;  %v4025_v61 = vpop.eup %4024  ;;  %4044 = vtanh.f32 %v2401_v6 }
 0x509   : > { %v4027_v25 = vpop.eup %4026  ;;  %4046 = vtanh.f32 %v2314_v15  ;;  %3460 = vmatmul.mubr.msk.f32.vlgmr.msra.gmra.mrb[80].mxu0 %vm252_vm0, %v3452_v53 }
 0x50a   : > { %v4029_v31 = vpop.eup %4028  ;;  %4048 = vtanh.f32 %v2403_v1  ;;  %3464 = vmatmul.mubr.msk.f32.vlgmr.msra.gmra.mrb[80].mxu1 %vm252_vm0, %v3452_v53  ;;  %2549 = vmatprep.mubr.f32.mxu0 %v4213_v0  ;;  %v3633_v40 = vpack.c.bf16 %v4027_v25, %v4019_v11 }
 0x50b   : > { %v4031_v48 = vpop.eup %4030  ;;  %2638 = vmatprep.mubr.f32.mxu1 %v4213_v0  ;;  %v3641_v55 = vpack.c.bf16 %v4029_v31, %v4021_v26  ;;  %v5155_v26 = vpop.permute.xlu0 %2449 }
 0x50c   : > { %v4033_v44 = vpop.eup %4032  ;;  %v3631_v41 = vpack.c.bf16 %v4031_v48, %v4023_v59  ;;  %v5161_v31 = vpop.permute.xlu1 %2454 }
 0x50d   : > { %v4035_v43 = vpop.eup %4034  ;;  %3461 = vmatmul.mubr.msk.f32.gmra.mrb[82].mxu0 %vm252_vm0, %v3453_v32  ;;  %v3639_v51 = vpack.c.bf16 %v4033_v44, %v4025_v61 }
 0x50e   : > { %v4037_v3 = vpop.eup %4036  ;;  %3465 = vmatmul.mubr.msk.f32.gmra.mrb[82].mxu1 %vm252_vm0, %v3453_v32  ;;  %3632 = vmatprep.subr.bf16.mxu0 %v3631_v41 }
 0x50f   : > { %v4039_v22 = vpop.eup %4038  ;;  %3640 = vmatprep.subr.bf16.mxu1 %v3639_v51  ;;  %3634 = vmatpush1.bf16.msra.mxu0 %v3633_v40 }
 0x510   : > { %v4041_v50 = vpop.eup %4040  ;;  %3642 = vmatpush1.bf16.msra.mxu1 %v3641_v55  ;;  %2555 = vmatprep.mubr.f32.mxu0 %v4213_v0 }
 0x511   : > { %v4043_v30 = vpop.eup %4042  ;;  %2644 = vmatprep.mubr.f32.mxu1 %v4213_v0  ;;  %3462 = vmatmul.mubr.msk.f32.gmra.mrb[84].mxu0 %vm252_vm0, %v3454_v45 }
 0x512   : > { %v4045_v36 = vpop.eup %4044  ;;  %3466 = vmatmul.mubr.msk.f32.gmra.mrb[84].mxu1 %vm252_vm0, %v3454_v45  ;;  %2561 = vmatprep.mubr.f32.mxu0 %v4213_v0  ;;  %v3637_v12 = vpack.c.bf16 %v4043_v30, %v4035_v43 }
 0x513   : > { %v4047_v4 = vpop.eup %4046  ;;  %2650 = vmatprep.mubr.f32.mxu1 %v4213_v0  ;;  %v3645_v11 = vpack.c.bf16 %v4045_v36, %v4037_v3  ;;  %v5167_v3 = vpop.permute.xlu0 %2459 }
 0x514   : > { %v4049_v57 = vpop.eup %4048  ;;  %v3635_v56 = vpack.c.bf16 %v4047_v4, %v4039_v22 }
 0x515   : > { %3463 = vmatmul.mubr.msk.f32.gmra.mrb[86].mxu0 %vm252_vm0, %v3455_v24  ;;  %v3643_v2 = vpack.c.bf16 %v4049_v57, %v4041_v50 }
 0x516   : > { %3467 = vmatmul.mubr.msk.f32.gmra.mrb[86].mxu1 %vm252_vm0, %v3455_v24  ;;  %3636 = vmatprep.subr.bf16.mxu0 %v3635_v56 }
 0x517   : > { %3644 = vmatprep.subr.bf16.mxu1 %v3643_v2  ;;  %3638 = vmatpush1.bf16.msra.mxu0 %v3637_v12 }
 0x518   : > { %3646 = vmatpush1.bf16.msra.mxu1 %v3645_v11  ;;  %2721 = vmatprep.mubr.f32.mxu0 %v4213_v0  ;;  %v5173_v11 = vpop.permute.xlu1 %2464 }
 0x519   : > { %2810 = vmatprep.mubr.f32.mxu1 %v4213_v0 }
 0x51a   : > { %3468 = vmatmul.mubr.msk.f32.vlgmr.msra.gmra.mrb[88].mxu0 %vm252_vm0, %v3452_v53 }
 0x51b   : > { %3472 = vmatmul.mubr.msk.f32.vlgmr.msra.gmra.mrb[88].mxu1 %vm252_vm0, %v3452_v53  ;;  %2727 = vmatprep.mubr.f32.mxu0 %v4213_v0 }
 0x51c   : > { %2816 = vmatprep.mubr.f32.mxu1 %v4213_v0 }
 0x51e   : > { %3469 = vmatmul.mubr.msk.f32.gmra.mrb[90].mxu0 %vm252_vm0, %v3453_v32 }
 0x51f   : > { %3473 = vmatmul.mubr.msk.f32.gmra.mrb[90].mxu1 %vm252_vm0, %v3453_v32  ;;  %2733 = vmatprep.mubr.f32.mxu0 %v4213_v0 }
 0x520   : > { %2822 = vmatprep.mubr.f32.mxu1 %v4213_v0 }
 0x522   : > { %3470 = vmatmul.mubr.msk.f32.gmra.mrb[92].mxu0 %vm252_vm0, %v3454_v45 }
 0x523   : > { %3474 = vmatmul.mubr.msk.f32.gmra.mrb[92].mxu1 %vm252_vm0, %v3454_v45  ;;  %2739 = vmatprep.mubr.f32.mxu0 %v4213_v0 }
 0x524   : > { %2828 = vmatprep.mubr.f32.mxu1 %v4213_v0 }
 0x526   : > { %3471 = vmatmul.mubr.msk.f32.gmra.mrb[94].mxu0 %vm252_vm0, %v3455_v24 }
 0x527   : > { %3475 = vmatmul.mubr.msk.f32.gmra.mrb[94].mxu1 %vm252_vm0, %v3455_v24  ;;  %2967 = vmatprep.mubr.f32.mxu0 %v4213_v0 }
 0x528   : > { %3038 = vmatprep.mubr.f32.mxu1 %v4213_v0 }
 0x5dc   : > { %v2545_v6 = vpop.f32.mrb[80].mxu0 }
 0x5dd   : > { %v2546_v15 = vadd.f32 %v2545_v6, %v5155_v26  ;;  %v2634_v29 = vpop.f32.mrb[80].mxu1  ;;  %v2547_v53 = vpop.f32.mrb[81].mxu0 }
 0x5de   : > { %v2635_v59 = vadd.f32 %v2634_v29, %v5155_v26  ;;  %v2548_v1 = vadd.f32 %v2547_v53, %v5155_v26  ;;  %v2636_v61 = vpop.f32.mrb[81].mxu1 }
 0x5df   : > { %4050 = vtanh.f32 %v2546_v15  ;;  %v2637_v25 = vadd.f32 %v2636_v61, %v5155_v26 }
 0x5e0   : > { %4052 = vtanh.f32 %v2635_v59  ;;  %v2551_v32 = vpop.f32.mrb[82].mxu0 }
 0x5e1   : > { %4054 = vtanh.f32 %v2548_v1  ;;  %v2552_v40 = vadd.f32 %v2551_v32, %v5161_v31  ;;  %v2640_v48 = vpop.f32.mrb[82].mxu1  ;;  %v2553_v55 = vpop.f32.mrb[83].mxu0 }
 0x5e2   : > { %4056 = vtanh.f32 %v2637_v25  ;;  %v2641_v44 = vadd.f32 %v2640_v48, %v5161_v31  ;;  %v2554_v41 = vadd.f32 %v2553_v55, %v5161_v31  ;;  %v2642_v43 = vpop.f32.mrb[83].mxu1 }
 0x5e3   : > { %4058 = vtanh.f32 %v2552_v40  ;;  %v2643_v51 = vadd.f32 %v2642_v43, %v5161_v31 }
 0x5e4   : > { %4060 = vtanh.f32 %v2641_v44  ;;  %v2557_v45 = vpop.f32.mrb[84].mxu0 }
 0x5e5   : > { %4062 = vtanh.f32 %v2554_v41  ;;  %v2558_v22 = vadd.f32 %v2557_v45, %v5167_v3  ;;  %v2646_v50 = vpop.f32.mrb[84].mxu1  ;;  %v2559_v30 = vpop.f32.mrb[85].mxu0 }
 0x5e6   : > { %4064 = vtanh.f32 %v2643_v51  ;;  %v2647_v36 = vadd.f32 %v2646_v50, %v5167_v3  ;;  %v2560_v24 = vadd.f32 %v2559_v30, %v5167_v3  ;;  %v2648_v12 = vpop.f32.mrb[85].mxu1 }
 0x5e7   : > { %4066 = vtanh.f32 %v2558_v22  ;;  %v2649_v4 = vadd.f32 %v2648_v12, %v5167_v3 }
 0x5e8   : > { %4068 = vtanh.f32 %v2647_v36  ;;  %v2563_v57 = vpop.f32.mrb[86].mxu0 }
 0x5e9   : > { %v4051_v56 = vpop.eup %4050  ;;  %4070 = vtanh.f32 %v2560_v24  ;;  %v2564_v2 = vadd.f32 %v2563_v57, %v5173_v11  ;;  %v2652_v6 = vpop.f32.mrb[86].mxu1 }
 0x5ea   : > { %v2565_v15 = vpop.f32.mrb[87].mxu0  ;;  %v4053_v29 = vpop.eup %4052  ;;  %4072 = vtanh.f32 %v2649_v4  ;;  %v2653_v53 = vadd.f32 %v2652_v6, %v5173_v11  ;;  %v2867_v55 = vadd.f32 %v4051_v56, %v4887_v10 }
 0x5eb   : > { %v2566_v59 = vadd.f32 %v2565_v15, %v5173_v11  ;;  %v2654_v1 = vpop.f32.mrb[87].mxu1  ;;  %v4055_v61 = vpop.eup %4054  ;;  %4074 = vtanh.f32 %v2564_v2  ;;  %v2869_v22 = vadd.f32 %v4053_v29, %v4903_v49 }
 0x5ec   : > { %v2655_v25 = vadd.f32 %v2654_v1, %v5173_v11  ;;  %v4057_v32 = vpop.eup %4056  ;;  %4076 = vtanh.f32 %v2653_v53  ;;  %v2868_v12 = vadd.f32 %v4055_v61, %v4884_v8 }
 0x5ed   : > { %v4059_v40 = vpop.eup %4058  ;;  %4078 = vtanh.f32 %v2566_v59  ;;  %v2723_v48 = vpop.f32.mrb[88].mxu0  ;;  %v2870_v6 = vadd.f32 %v4057_v32, %v4897_v20 }
 0x5ee   : > { %v4061_v44 = vpop.eup %4060  ;;  %4080 = vtanh.f32 %v2655_v25  ;;  %v2724_v41 = vadd.f32 %v2723_v48, %v5155_v26  ;;  %v2812_v43 = vpop.f32.mrb[88].mxu1  ;;  %v2875_v45 = vadd.f32 %v4059_v40, %v4879_v13 }
 0x5ef   : > { %v2725_v51 = vpop.f32.mrb[89].mxu0  ;;  %v4063_v50 = vpop.eup %4062  ;;  %v2813_v30 = vadd.f32 %v2812_v43, %v5155_v26  ;;  %v2877_v10 = vadd.f32 %v4061_v44, %v4894_v33 }
 0x5f0   : > { %v2726_v36 = vadd.f32 %v2725_v51, %v5155_v26  ;;  %v2814_v24 = vpop.f32.mrb[89].mxu1  ;;  %v4065_v4 = vpop.eup %4064  ;;  %4082 = vtanh.f32 %v2724_v41  ;;  %v2876_v56 = vadd.f32 %v4063_v50, %v4891_v14  ;;  %v3649_v2 = vpack.c.bf16 %v2875_v45, %v2867_v55 }
 0x5f1   : > { %v2815_v57 = vadd.f32 %v2814_v24, %v5155_v26  ;;  %v4067_v13 = vpop.eup %4066  ;;  %4084 = vtanh.f32 %v2813_v30  ;;  %v2729_v49 = vpop.f32.mrb[90].mxu0  ;;  %v2878_v15 = vadd.f32 %v4065_v4, %v4900_v42  ;;  %v3657_v29 = vpack.c.bf16 %v2877_v10, %v2869_v22 }
 0x5f2   : > { %v4069_v53 = vpop.eup %4068  ;;  %4086 = vtanh.f32 %v2726_v36  ;;  %v2730_v8 = vadd.f32 %v2729_v49, %v5161_v31  ;;  %v2818_v33 = vpop.f32.mrb[90].mxu1  ;;  %v3647_v1 = vpack.c.bf16 %v2876_v56, %v2868_v12  ;;  %v2883_v44 = vadd.f32 %v4067_v13, %v4919_v35 }
 0x5f3   : > { %v2731_v59 = vpop.f32.mrb[91].mxu0  ;;  %v4071_v61 = vpop.eup %4070  ;;  %4088 = vtanh.f32 %v2815_v57  ;;  %v2819_v14 = vadd.f32 %v2818_v33, %v5161_v31  ;;  %v3655_v40 = vpack.c.bf16 %v2878_v15, %v2870_v6  ;;  %v2899_v33 = vld [vmem:[%s5288_s3] sm:$0x1] }
 0x5f4   : > { %v2732_v26 = vadd.f32 %v2731_v59, %v5161_v31  ;;  %v2820_v25 = vpop.f32.mrb[91].mxu1  ;;  %v4073_v48 = vpop.eup %4072  ;;  %4090 = vtanh.f32 %v2730_v8  ;;  %3648 = vmatprep.subr.bf16.mxu0 %v3647_v1  ;;  %v2884_v55 = vadd.f32 %v4071_v61, %v4927_v16 }
 0x5f5   : > { %v2821_v20 = vadd.f32 %v2820_v25, %v5161_v31  ;;  %v4075_v42 = vpop.eup %4074  ;;  %4092 = vtanh.f32 %v2819_v14  ;;  %3656 = vmatprep.subr.bf16.mxu1 %v3655_v40  ;;  %v2735_v32 = vpop.f32.mrb[92].mxu0  ;;  %3650 = vmatpush1.bf16.msra.mxu0 %v3649_v2  ;;  %v2885_v31 = vadd.f32 %v4069_v53, %v4943_v60  ;;  %v2886_v60 = vadd.f32 %v4073_v48, %v4937_v23 }
 0x5f6   : > { %v4077_v41 = vpop.eup %4076  ;;  %4094 = vtanh.f32 %v2732_v26  ;;  %v2736_v43 = vadd.f32 %v2735_v32, %v5167_v3  ;;  %v2824_v51 = vpop.f32.mrb[92].mxu1  ;;  %3658 = vmatpush1.bf16.msra.mxu1 %v3657_v29  ;;  %v2891_v22 = vadd.f32 %v4075_v42, %v4922_v28 }
 0x5f7   : > { %v2737_v45 = vpop.f32.mrb[93].mxu0  ;;  %v4079_v50 = vpop.eup %4078  ;;  %4096 = vtanh.f32 %v2821_v20  ;;  %v2825_v30 = vadd.f32 %v2824_v51, %v5167_v3  ;;  %v2893_v35 = vadd.f32 %v4077_v41, %v4934_v63 }
 0x5f8   : > { %v2738_v36 = vadd.f32 %v2737_v45, %v5167_v3  ;;  %v2826_v16 = vpop.f32.mrb[93].mxu1  ;;  %v4081_v24 = vpop.eup %4080  ;;  %4098 = vtanh.f32 %v2736_v43  ;;  %v2892_v10 = vadd.f32 %v4079_v50, %v4931_v52  ;;  %v3653_v4 = vpack.c.bf16 %v2891_v22, %v2883_v44 }
 0x5f9   : > { %v2827_v12 = vadd.f32 %v2826_v16, %v5167_v3  ;;  %4100 = vtanh.f32 %v2825_v30  ;;  %v2741_v28 = vpop.f32.mrb[94].mxu0  ;;  %v2894_v57 = vadd.f32 %v4081_v24, %v4940_v37  ;;  %v3661_v56 = vpack.c.bf16 %v2893_v35, %v2885_v31 }
 0x5fa   : > { %v4083_v2 = vpop.eup %4082  ;;  %4102 = vtanh.f32 %v2738_v36  ;;  %v2742_v13 = vadd.f32 %v2741_v28, %v5173_v11  ;;  %v2830_v49 = vpop.f32.mrb[94].mxu1  ;;  %v3651_v6 = vpack.c.bf16 %v2892_v10, %v2884_v55 }
 0x5fb   : > { %v2743_v63 = vpop.f32.mrb[95].mxu0  ;;  %v4085_v15 = vpop.eup %4084  ;;  %4104 = vtanh.f32 %v2827_v12  ;;  %v2831_v3 = vadd.f32 %v2830_v49, %v5173_v11  ;;  %v3659_v53 = vpack.c.bf16 %v2894_v57, %v2886_v60  ;;  %v2871_v61 = vadd.f32 %v4083_v2, %v4990_v58 }
 0x5fc   : > { %v2744_v52 = vadd.f32 %v2743_v63, %v5173_v11  ;;  %v2832_v29 = vpop.f32.mrb[95].mxu1  ;;  %v4087_v8 = vpop.eup %4086  ;;  %4106 = vtanh.f32 %v2742_v13  ;;  %3652 = vmatprep.subr.bf16.mxu0 %v3651_v6 }
 0x5fd   : > { %v2833_v23 = vadd.f32 %v2832_v29, %v5173_v11  ;;  %v4089_v37 = vpop.eup %4088  ;;  %4108 = vtanh.f32 %v2831_v3  ;;  %3660 = vmatprep.subr.bf16.mxu1 %v3659_v53  ;;  %3654 = vmatpush1.bf16.msra.mxu0 %v3653_v4  ;;  %v2873_v11 = vadd.f32 %v4085_v15, %v4995_v21  ;;  %v2872_v48 = vadd.f32 %v4087_v8, %v4974_v34 }
 0x5fe   : > { %v4091_v59 = vpop.eup %4090  ;;  %4110 = vtanh.f32 %v2744_v52  ;;  %3662 = vmatpush1.bf16.msra.mxu1 %v3661_v56 }
 0x5ff   : > { %v4093_v1 = vpop.eup %4092  ;;  %4112 = vtanh.f32 %v2833_v23  ;;  %v2879_v14 = vadd.f32 %v4091_v59, %v4965_v18  ;;  %v2874_v18 = vadd.f32 %v4089_v37, %v4984_v9 }
 0x600   : > { %v4095_v26 = vpop.eup %4094  ;;  %3476 = vmatmul.mubr.msk.f32.vlgmr.msra.gmra.mrb[96].mxu0 %vm252_vm0, %v2899_v33  ;;  %v2881_v25 = vadd.f32 %v4093_v1, %v4980_v7 }
 0x601   : > { %v4097_v40 = vpop.eup %4096  ;;  %v2880_v20 = vadd.f32 %v4095_v26, %v4977_v39  ;;  %3477 = vmatmul.mubr.msk.f32.vlgmr.msra.gmra.mrb[96].mxu1 %vm252_vm0, %v2899_v33  ;;  %v3665_v42 = vpack.c.bf16 %v2879_v14, %v2871_v61  ;;  %3109 = vmatprep.mubr.f32.mxu0 %v4213_v0 }
 0x602   : > { %v4099_v58 = vpop.eup %4098  ;;  %v2882_v32 = vadd.f32 %v4097_v40, %v4987_v27  ;;  %v3673_v55 = vpack.c.bf16 %v2881_v25, %v2873_v11  ;;  %3180 = vmatprep.mubr.f32.mxu1 %v4213_v0 }
 0x603   : > { %v4101_v21 = vpop.eup %4100  ;;  %v3663_v7 = vpack.c.bf16 %v2880_v20, %v2872_v48  ;;  %v2887_v51 = vadd.f32 %v4099_v58, %v5036_v54 }
 0x604   : > { %v4103_v44 = vpop.eup %4102  ;;  %v3671_v41 = vpack.c.bf16 %v2882_v32, %v2874_v18  ;;  %v2889_v27 = vadd.f32 %v4101_v21, %v5041_v47 }
 0x605   : > { %v4105_v34 = vpop.eup %4104  ;;  %3664 = vmatprep.subr.bf16.mxu0 %v3663_v7  ;;  %v2888_v31 = vadd.f32 %v4103_v44, %v5020_v46 }
 0x606   : > { %v4107_v39 = vpop.eup %4106  ;;  %3672 = vmatprep.subr.bf16.mxu1 %v3671_v41  ;;  %3666 = vmatpush1.bf16.msra.mxu0 %v3665_v42  ;;  %v2890_v36 = vadd.f32 %v4105_v34, %v5030_v5 }
 0x607   : > { %v4109_v43 = vpop.eup %4108  ;;  %3674 = vmatpush1.bf16.msra.mxu1 %v3673_v55  ;;  %v2895_v9 = vadd.f32 %v4107_v39, %v5012_v17  ;;  %v4215_v17 = vmov 1966171168  }
 0x608   : > { %v4111_v45 = vpop.eup %4110  ;;  %v2897_v0 = vadd.f32 %v4109_v43, %v5026_v19  ;;  %v3200_v46 = vunpack.c.l.s4 %v4215_v17  ;;  %v3202_v19 = vlaneseq }
 0x609   : > { %v4113_v22 = vpop.eup %4112  ;;  %v2896_v50 = vadd.f32 %v4111_v45, %v5023_v62  ;;  %v3669_v30 = vpack.c.bf16 %v2895_v9, %v2887_v51 }
 0x60a   : > { %v2898_v16 = vadd.f32 %v4113_v22, %v5033_v38  ;;  %v3677_v35 = vpack.c.bf16 %v2897_v0, %v2889_v27  ;;  %v3201_v62 = vunpack.c.0.s8 %v3200_v46  ;;  %v3203_v47 = vshrl.u32 %v3202_v19, 7 }
 0x60b   : > { %v3667_v24 = vpack.c.bf16 %v2896_v50, %v2888_v31 }
 0x60c   : > { %v3675_v54 = vpack.c.bf16 %v2898_v16, %v2890_v36  ;;  %v3204_v12 = vsub.s32 %v3201_v62, %v3203_v47 }
 0x60d   : > { %3668 = vmatprep.subr.bf16.mxu0 %v3667_v24 }
 0x60e   : > { %3676 = vmatprep.subr.bf16.mxu1 %v3675_v54  ;;  %3670 = vmatpush1.bf16.msra.mxu0 %v3669_v30 }
 0x60f   : > { %3678 = vmatpush1.bf16.msra.mxu1 %v3677_v35 }
 0x611   : > { %3478 = vmatmul.mubr.msk.f32.vlgmr.msra.gmra.mrb[98].mxu0 %vm252_vm0, %v2899_v33 }
 0x612   : > { %3479 = vmatmul.mubr.msk.f32.vlgmr.msra.gmra.mrb[98].mxu1 %vm252_vm0, %v2899_v33 }
 0x6d3   : > { %v2969_v5 = vpop.f32.mrb[96].mxu0 }
 0x6d4   : > { %v3040_v38 = vpop.f32.mrb[96].mxu1  ;;  %v2971_v10 = vpop.f32.mrb[97].mxu0 }
 0x6d5   : > { %v3195_v4 = vcombine.low %v2969_v5, %v2971_v10  ;;  %v3042_v28 = vpop.f32.mrb[97].mxu1 }
 0x6d6   : > { %v3196_v60 = vcombine.low %v3040_v38, %v3042_v28 }
 0x6d7   : > { %v3205_v57 = vrot.slane %v3195_v4, %v3204_v12 }
 0x6d8   : > { %v3212_v56 = vrot.slane %v3196_v60, %v3204_v12 }
 0x6da   : > { %v3227_v2 = vcombine.low %v3205_v57, %v3212_v56 }
 0x6dc   : > { %v3235_v8 = vrot.slane %v3227_v2, %v3204_v12 }
 0x6e4   : > { %v3111_v13 = vpop.f32.mrb[98].mxu0 }
 0x6e5   : > { %v3182_v49 = vpop.f32.mrb[98].mxu1  ;;  %v3113_v63 = vpop.f32.mrb[99].mxu0 }
 0x6e6   : > { %v3197_v6 = vcombine.low %v3111_v13, %v3113_v63  ;;  %v3184_v15 = vpop.f32.mrb[99].mxu1 }
 0x6e7   : > { %v3198_v3 = vcombine.low %v3182_v49, %v3184_v15 }
 0x6e8   : > { %v3219_v52 = vrot.slane %v3197_v6, %v3204_v12 }
 0x6e9   : > { %v3226_v29 = vrot.slane %v3198_v3, %v3204_v12 }
 0x6eb   : > { %v3228_v53 = vcombine.low %v3219_v52, %v3226_v29 }
 0x6ed   : > { %v3242_v23 = vrot.slane %v3228_v53, %v3204_v12 }
 0x6ef   : > { %v3243_v37 = vcombine.low %v3235_v8, %v3242_v23 }
 0x6f1   : > { %3245 = vst [vmem:[%s213_s12] sm:$0xff] %v3243_v37 }
 0x6f2   : > { %4157 = shalt.err (!%p4154_p4)
}
 0x6f3   : > { %s4158_s7 = scalar_lea.hbm %s5241_s25, 128  ;;  %s4162_s14 = scalar_lea.hbm %s5289_s4, 256 }
 0x6f4   : > { %p4159_p5 = scmp.ne.s32.totalorder %s5241_s25, %s4158_s7  ;;  %p4163_p0 = scmp.lt.u32.totalorder %s5241_s25, %s5289_s4 }
 0x6f5   : > { %p4164_p1 = scmp.lt.u32.totalorder %s4162_s14, %s4158_s7  ;;  %p4166_p6 = scmp.lt.u32.totalorder %s4158_s7, %s5241_s25 }
 0x6f6   : > { %p4160_p8 = pnand %p4159_p5, %p5298_p11 }
 0x6f7   : > { %p4165_p3 = por %p4164_p1, %p4163_p0 }
 0x6f8   : > { %p4161_p9 = pneg %p4160_p8 }
 0x6f9   : > { %p4167_p12 = por %p4166_p6, %p4165_p3 }
 0x6fb   : > { %p4168_p13 = pnand %p4167_p12, %p4161_p9 }
 0x6fd   : > { %4171 = shalt.err (!%p4168_p13)
}
 0x6fe   : > { %3681 = dma.vmem_to_hbm [thread:$0]  (%p5298_p11), %s5243_s20, 128, %s5241_s25, %s3247_s29  }
 0x6ff PF: > { %s3273_s10 = sand.u32 1, %s4198_s15   ;;  %p5299_p7 = scmp.ne.s32.totalorder %s5294_s28, 0 }
 0x700   : > { %p5300_p10 = scmp.ge.s32.totalorder %s4210_s18, 2  ;;  %s3274_s11 = scalar_lea.sflag [#allocation4], %s3273_s10 }
 0x702   : > { %p3688_p2 = pnand %p5300_p10, %p5299_p7 }
 0x704   : > { %4193 = dma.done.wait (!%p3688_p2), %s3274_s11, 128  }
 0x705   : > { %4195 = vsyncadd (!%p3688_p2), %s3274_s11, 4294967168  ;;  %p17_p4 = scmp.ge.s32.totalorder %s4267_s21, 4   ;;  %s5301_s15 = smov %s4202_s16 }
 0x706   : > { %s5302_s16 = smov %s4206_s17  ;;  %s5303_s17 = smov %s4279_s24 }
 0x707   : > { %s5304_s18 = smov %s4267_s21  ;;  %19 = sbr.rel (!%p17_p4) target bundleno = 5 (0x5), region = 91 }
 0x70e   :  { %3279 = vsyncpa [#allocation3], 1 }
 0x70f   :  { %3281 = vsyncpa [#allocation3 + $0x1], 1 }
 0x710   :  { %3282 = vsyncpa [#allocation4], 1 }
 0x711   :  { %3284 = vsyncpa [#allocation4 + $0x1], 1 }

</bundles_post_ra>
